<compile_context>
chip_gen: v7x
topology: tpu7x:2x2x1
jax: 0.10.0
libtpu: 0.0.40
codegen_flags: <defaults>
</compile_context>

<pallas_src>
import functools

import jax
import jax.numpy as jnp
from jax.experimental import pallas as pl
from jax.experimental.pallas import tpu as pltpu


def _pick_m_tile(m):
    # 128-row tiles when they divide M exactly, else the full dim (always legal).
    return 128 if m % 128 == 0 else m


def _pick_n_tile(n):
    # Prefer 256-wide N tiles (fills the 2x256^2 MXU on v6e/v7x and gives v7x's
    # two TensorCores separate tiles on the 512-channel layers).
    if n % 256 == 0:
        return 256
    if n % 128 == 0:
        return 128
    return n


# ----------------------------------------------------------------------------
# Fused matmul kernel: out = act(A @ W_scaled + shift)
#   bf16 operands, f32 MXU accumulation, K fully resident (no K grid axis).
#   BN scale is folded into W at trace time; only the shift add remains here.
# ----------------------------------------------------------------------------
def _matmul_fused_kernel(a_ref, w_ref, shift_ref, o_ref, *, activation):
    acc = jnp.dot(a_ref[...], w_ref[...], preferred_element_type=jnp.float32)
    out = acc + shift_ref[...]
    if activation == "relu":
        out = jnp.maximum(out, 0.0)
    elif activation == "tanh":
        out = jnp.tanh(out)
    o_ref[...] = out.astype(o_ref.dtype)


def matmul_fused(a, w_scaled, shift, activation="none", out_dtype=jnp.bfloat16):
    """a: (M, K) bf16-castable, w_scaled: (K, N) bf16 with BN scale folded in,
    shift: (N,) f32 BN shift."""
    M, K = a.shape
    K2, N = w_scaled.shape
    assert K == K2
    a = a.astype(jnp.bfloat16)
    w_scaled = w_scaled.astype(jnp.bfloat16)
    shift = shift.reshape(1, N).astype(jnp.float32)
    tm = _pick_m_tile(M)
    tn = _pick_n_tile(N)
    return pl.pallas_call(
        functools.partial(_matmul_fused_kernel, activation=activation),
        out_shape=jax.ShapeDtypeStruct((M, N), out_dtype),
        grid=(M // tm, N // tn),
        in_specs=[
            pl.BlockSpec((tm, K), lambda i, j: (i, 0)),
            pl.BlockSpec((K, tn), lambda i, j: (0, j)),
            pl.BlockSpec((1, tn), lambda i, j: (0, j)),
        ],
        out_specs=pl.BlockSpec((tm, tn), lambda i, j: (i, j)),
        compiler_params=pltpu.CompilerParams(
            dimension_semantics=("parallel", "parallel")),
    )(a, w_scaled, shift)


# ----------------------------------------------------------------------------
# 3x3 / stride-1 / pad-1 conv on a zero-padded NHWC frame, no im2col.
# The padded activation is flattened to (B*Hp*Wp, Cin); each of the 9 kernel taps
# is the same matrix shifted by a fixed (static) number of rows, read in-kernel
# from the VMEM-resident buffer.  BN shift (scale already folded into the
# weights), an optional residual add, the ReLU and the halo-zeroing mask are all
# fused into the epilogue.
# ----------------------------------------------------------------------------
def _conv3x3_tap_kernel(*refs, wp, m_out, activation, has_residual):
    if has_residual:
        xg_ref, w_ref, shift_ref, mask_ref, res_ref, o_ref = refs
    else:
        xg_ref, w_ref, shift_ref, mask_ref, o_ref = refs
        res_ref = None
    tn = o_ref.shape[1]
    acc = jnp.zeros((m_out, tn), jnp.float32)
    for t in range(9):
        di, dj = divmod(t, 3)
        off = di * wp + dj                                      # static row offset
        a = xg_ref[pl.ds(off, m_out), :].astype(jnp.bfloat16)   # shifted tap window
        acc = acc + jnp.dot(a, w_ref[t], preferred_element_type=jnp.float32)
    out = acc + shift_ref[...]
    if has_residual:
        out = out + res_ref[...].astype(jnp.float32)
    if activation == "relu":
        out = jnp.maximum(out, 0.0)
    out = out * mask_ref[...]            # keep the zero halo of the padded frame
    o_ref[...] = out.astype(o_ref.dtype)


def conv3x3_s1_bn_act(xp, w, scale, shift, activation="relu", residual_p=None):
    """xp: (B, H+2, W+2, Cin) with zero halo.  residual_p (optional): same padded
    frame with Cout channels.  Returns (B, H+2, W+2, Cout) with zero halo, bf16."""
    B, Hp, Wp, Cin = xp.shape
    H, W = Hp - 2, Wp - 2
    Cout = w.shape[-1]
    Mw = B * Hp * Wp
    guard = Wp + 1                        # guard rows keep all 9 windows in bounds

    xf = xp.astype(jnp.float32).reshape(Mw, Cin)
    xg = jnp.pad(xf, ((guard, guard), (0, 0)))
    # Fold BN scale into the weights (f32 fold, bf16 store).
    wt = (w.astype(jnp.float32) * scale.reshape(1, 1, 1, Cout)
          ).astype(jnp.bfloat16).reshape(9, Cin, Cout)
    shift = shift.reshape(1, Cout).astype(jnp.float32)
    # Validity mask of the padded frame (constant-folded under jit).
    mask = jnp.zeros((B, Hp, Wp), jnp.float32).at[:, 1:H + 1, 1:W + 1].set(1.0)
    mask = mask.reshape(Mw, 1)

    tn = _pick_n_tile(Cout)
    Mg = Mw + 2 * guard

    in_specs = [
        pl.BlockSpec((Mg, Cin), lambda j: (0, 0)),       # resident across N tiles
        pl.BlockSpec((9, Cin, tn), lambda j: (0, 0, j)),
        pl.BlockSpec((1, tn), lambda j: (0, j)),
        pl.BlockSpec((Mw, 1), lambda j: (0, 0)),
    ]
    args = [xg, wt, shift, mask]
    has_residual = residual_p is not None
    if has_residual:
        in_specs.append(pl.BlockSpec((Mw, tn), lambda j: (0, j)))
        args.append(residual_p.astype(jnp.bfloat16).reshape(Mw, Cout))

    out = pl.pallas_call(
        functools.partial(_conv3x3_tap_kernel, wp=Wp, m_out=Mw,
                          activation=activation, has_residual=has_residual),
        out_shape=jax.ShapeDtypeStruct((Mw, Cout), jnp.bfloat16),
        grid=(Cout // tn,),
        in_specs=in_specs,
        out_specs=pl.BlockSpec((Mw, tn), lambda j: (0, j)),
        compiler_params=pltpu.CompilerParams(dimension_semantics=("parallel",)),
    )(*args)
    return out.reshape(B, Hp, Wp, Cout)


# ----------------------------------------------------------------------------
# Fused head: global average pool + fc(512->36) + activate-mask in one kernel.
# The mask is folded into the fc weights/bias, so masked columns are exactly 0.
# ----------------------------------------------------------------------------
def _head_kernel(x_ref, w_ref, b_ref, o_ref, *, inv_hw):
    feat = jnp.sum(x_ref[...].astype(jnp.float32), axis=1) * inv_hw   # (B, C)
    out = jnp.dot(feat.astype(jnp.bfloat16), w_ref[...],
                  preferred_element_type=jnp.float32)
    o_ref[...] = out + b_ref[...]


def avgpool_fc_masked(x, fc_w, fc_b, col_mask):
    B, H, W, C = x.shape
    N = fc_w.shape[1]
    x3 = x.astype(jnp.bfloat16).reshape(B, H * W, C)
    wm = (fc_w.astype(jnp.float32) * col_mask[None, :]).astype(jnp.bfloat16)
    bm = (fc_b.astype(jnp.float32) * col_mask).reshape(1, N)
    return pl.pallas_call(
        functools.partial(_head_kernel, inv_hw=1.0 / (H * W)),
        out_shape=jax.ShapeDtypeStruct((B, N), jnp.float32),
        grid=(1,),
        in_specs=[
            pl.BlockSpec((B, H * W, C), lambda i: (0, 0, 0)),
            pl.BlockSpec((C, N), lambda i: (0, 0)),
            pl.BlockSpec((1, N), lambda i: (0, 0)),
        ],
        out_specs=pl.BlockSpec((B, N), lambda i: (0, 0)),
    )(x3, wm, bm)


# ----------------------------------------------------------------------------
# MaxPool 3x3 / s2 / p1 as a 9-tap maximum tree (fused by XLA into one pass).
# ----------------------------------------------------------------------------
def maxpool_3x3_s2_p1(x):
    B, H, W, C = x.shape
    Hout = (H + 2 - 3) // 2 + 1
    Wout = (W + 2 - 3) // 2 + 1
    neg = float(jnp.finfo(x.dtype).min)
    xp = jnp.pad(x, ((0, 0), (1, 1), (1, 1), (0, 0)), constant_values=neg)
    out = None
    for di in range(3):
        for dj in range(3):
            tap = xp[:, di:di + 2 * Hout:2, dj:dj + 2 * Wout:2, :]
            out = tap if out is None else jnp.maximum(out, tap)
    return out


# ----------------------------------------------------------------------------
# General conv (7x7 stem, stride-2 3x3, 1x1 downsample) via bf16 im2col + Pallas.
# BN scale folded into the weights before the matmul.
# ----------------------------------------------------------------------------
def conv2d_im2col_bn_act(x, w, scale, shift, stride, padding, activation):
    B, H, W, Cin = x.shape
    kh, kw, _, Cout = w.shape
    sh, sw = stride
    ph, pw = padding
    Hout = (H + 2 * ph - kh) // sh + 1
    Wout = (W + 2 * pw - kw) // sw + 1
    xb = x.astype(jnp.bfloat16)
    if kh == 1 and kw == 1 and ph == 0 and pw == 0:
        a = xb[:, ::sh, ::sw, :][:, :Hout, :Wout, :].reshape(B * Hout * Wout, Cin)
    else:
        xpad = jnp.pad(xb, ((0, 0), (ph, ph), (pw, pw), (0, 0)))
        cols = [xpad[:, di:di + sh * Hout:sh, dj:dj + sw * Wout:sw, :]
                for di in range(kh) for dj in range(kw)]
        a = jnp.concatenate(cols, axis=-1).reshape(B * Hout * Wout, kh * kw * Cin)
    wm = (w.astype(jnp.float32).reshape(kh * kw * Cin, Cout)
          * scale.reshape(1, Cout)).astype(jnp.bfloat16)
    out = matmul_fused(a, wm, shift, activation)
    return out.reshape(B, Hout, Wout, Cout)


# ----------------------------------------------------------------------------
# ResNet-18 parameters (deterministic synthetic init) and forward pass
# ----------------------------------------------------------------------------
RESNET_CFG = [(64, 64, 1), (64, 128, 2), (128, 256, 2), (256, 512, 2)]


def _conv_w(key, kh, kw, cin, cout):
    std = (2.0 / (kh * kw * cin)) ** 0.5
    return (jax.random.normal(key, (kh, kw, cin, cout), jnp.float32) * std
            ).astype(jnp.bfloat16)


def _bn(key, c):
    k1, k2, k3, k4 = jax.random.split(key, 4)
    gamma = 1.0 + 0.1 * jax.random.normal(k1, (c,), jnp.float32)
    beta = 0.1 * jax.random.normal(k2, (c,), jnp.float32)
    mean = 0.1 * jax.random.normal(k3, (c,), jnp.float32)
    var = 0.5 + jax.random.uniform(k4, (c,), jnp.float32)
    s = gamma / jnp.sqrt(var + 1e-5)
    t = beta - mean * s
    return s, t


def init_resnet18_params(key):
    keys = iter(jax.random.split(key, 128))
    p = {}
    p["conv1_w"] = _conv_w(next(keys), 7, 7, 9, 64)            # 9-channel stem
    p["bn1"] = _bn(next(keys), 64)
    layers = []
    for cin, cout, stride in RESNET_CFG:
        blocks = []
        for b in range(2):
            st = stride if b == 0 else 1
            c_in = cin if b == 0 else cout
            blk = {
                "conv1_w": _conv_w(next(keys), 3, 3, c_in, cout),
                "bn1": _bn(next(keys), cout),
                "conv2_w": _conv_w(next(keys), 3, 3, cout, cout),
                "bn2": _bn(next(keys), cout),
            }
            if st != 1 or c_in != cout:
                blk["down_w"] = _conv_w(next(keys), 1, 1, c_in, cout)
                blk["down_bn"] = _bn(next(keys), cout)
            blocks.append(blk)
        layers.append(blocks)
    p["layers"] = layers
    p["fc_w"] = 0.05 * jax.random.normal(next(keys), (512, 36), jnp.float32)
    p["fc_b"] = 0.05 * jax.random.normal(next(keys), (36,), jnp.float32)
    return p


def basic_block(x, blk, stride):
    s1, t1 = blk["bn1"]
    s2, t2 = blk["bn2"]
    if stride == 1 and "down_w" not in blk:
        xp = jnp.pad(x, ((0, 0), (1, 1), (1, 1), (0, 0)))
        out1p = conv3x3_s1_bn_act(xp, blk["conv1_w"], s1, t1, activation="relu")
        out2p = conv3x3_s1_bn_act(out1p, blk["conv2_w"], s2, t2,
                                  activation="relu", residual_p=xp)
    else:
        out1 = conv2d_im2col_bn_act(x, blk["conv1_w"], s1, t1,
                                    stride=(stride, stride), padding=(1, 1),
                                    activation="relu")
        sd, td = blk["down_bn"]
        idn = conv2d_im2col_bn_act(x, blk["down_w"], sd, td,
                                   stride=(stride, stride), padding=(0, 0),
                                   activation="none")
        out1p = jnp.pad(out1, ((0, 0), (1, 1), (1, 1), (0, 0)))
        idn_p = jnp.pad(idn, ((0, 0), (1, 1), (1, 1), (0, 0)))
        out2p = conv3x3_s1_bn_act(out1p, blk["conv2_w"], s2, t2,
                                  activation="relu", residual_p=idn_p)
    return out2p[:, 1:-1, 1:-1, :]


def select_network_forward(params, x_nchw):
    x = jnp.transpose(x_nchw, (0, 2, 3, 1)).astype(jnp.bfloat16)   # NCHW -> NHWC
    s, t = params["bn1"]
    x = conv2d_im2col_bn_act(x, params["conv1_w"], s, t,
                             stride=(2, 2), padding=(3, 3), activation="relu")
    x = maxpool_3x3_s2_p1(x)
    for li, blocks in enumerate(params["layers"]):
        first_stride = RESNET_CFG[li][2]
        for bi, blk in enumerate(blocks):
            x = basic_block(x, blk, first_stride if bi == 0 else 1)
    # activate_tensor [[1,0,1],[0,1,1]] flattened over the trailing (2,3) dims
    col_mask = jnp.tile(jnp.asarray([1., 0., 1., 0., 1., 1.], jnp.float32), 6)
    out = avgpool_fc_masked(x, params["fc_w"], params["fc_b"], col_mask)  # (B,36)
    return out.reshape(x_nchw.shape[0], 6, 2, 3)


if __name__ == "__main__":
    key = jax.random.PRNGKey(0)
    pkey, xkey = jax.random.split(key)
    params = init_resnet18_params(pkey)

    # Small deterministic input: batch=2, 9 channels (module requires 9), 64x64.
    x = jax.random.normal(xkey, (2, 9, 64, 64), jnp.float32)

    fwd = jax.jit(select_network_forward)
    theta = jax.block_until_ready(fwd(params, x))

    assert theta.shape == (2, 6, 2, 3), theta.shape
    # masked positions ([:, :, 0, 1] and [:, :, 1, 0]) must be exactly zero
    assert bool(jnp.all(theta[:, :, 0, 1] == 0.0))
    assert bool(jnp.all(theta[:, :, 1, 0] == 0.0))
    print("KERNEL_OK")
</pallas_src>

<mosaic_0001>
module attributes {stable_mosaic.version = 11 : i64} {
  func.func @_matmul_fused_kernel(%arg0: i32, %arg1: i32, %arg2: memref<128x441xbf16, #tpu.memory_space<vmem>>, %arg3: memref<441x64xbf16, #tpu.memory_space<vmem>>, %arg4: memref<1x64xf32, #tpu.memory_space<vmem>>, %arg5: memref<128x64xbf16, #tpu.memory_space<vmem>>) attributes {dimension_semantics = [#tpu.dimension_semantics<parallel>, #tpu.dimension_semantics<parallel>], iteration_bounds = array<i64: 16, 1>, scalar_prefetch = 0 : i64, scratch_operands = 0 : i64, tpu.core_type = #tpu.core_type<tc>, window_params = [{transform_indices = @transform_0, window_bounds = array<i64: 128, 441>}, {transform_indices = @transform_1, window_bounds = array<i64: 441, 64>}, {transform_indices = @transform_2, window_bounds = array<i64: 1, 64>}, {transform_indices = @transform_3, window_bounds = array<i64: 128, 64>}]} {
    %c0 = arith.constant 0 : index
    %c0_0 = arith.constant 0 : index
    %0 = vector.load %arg2[%c0, %c0_0] : memref<128x441xbf16, #tpu.memory_space<vmem>>, vector<128x441xbf16>
    %c0_1 = arith.constant 0 : index
    %c0_2 = arith.constant 0 : index
    %1 = vector.load %arg3[%c0_1, %c0_2] : memref<441x64xbf16, #tpu.memory_space<vmem>>, vector<441x64xbf16>
    %cst = arith.constant dense<0.000000e+00> : vector<128x64xf32>
    %2 = tpu.matmul %0, %1, %cst {dimension_numbers = #tpu.dot_dimension_numbers<[1], [0], [0], [1], [0, 0, 1, 1], [], []>} : vector<128x441xbf16>, vector<441x64xbf16>, vector<128x64xf32> -> vector<128x64xf32>
    %c0_3 = arith.constant 0 : index
    %c0_4 = arith.constant 0 : index
    %3 = vector.load %arg4[%c0_3, %c0_4] : memref<1x64xf32, #tpu.memory_space<vmem>>, vector<1x64xf32>
    %4 = vector.broadcast %3 : vector<1x64xf32> to vector<128x64xf32>
    %5 = arith.addf %2, %4 : vector<128x64xf32>
    %cst_5 = arith.constant 0.000000e+00 : f32
    %6 = vector.broadcast %cst_5 : f32 to vector<128x64xf32>
    %7 = arith.maximumf %5, %6 : vector<128x64xf32>
    %8 = arith.truncf %7 : vector<128x64xf32> to vector<128x64xbf16>
    %c0_6 = arith.constant 0 : index
    %c0_7 = arith.constant 0 : index
    %9 = vector.load %arg5[%c0_6, %c0_7] : memref<128x64xbf16, #tpu.memory_space<vmem>>, vector<128x64xbf16>
    tpu.vector_store %arg5[%c0_6, %c0_7], %8 {strides = array<i32>} : memref<128x64xbf16, #tpu.memory_space<vmem>>, vector<128x64xbf16>,
    return
  }
  func.func @transform_0(%arg0: i32, %arg1: i32) -> (i32, i32) {
    %c0_i32 = arith.constant 0 : i32
    %c0_i32_0 = arith.constant 0 : i32
    return %arg0, %c0_i32 : i32, i32
  }
  func.func @transform_1(%arg0: i32, %arg1: i32) -> (i32, i32) {
    %c0_i32 = arith.constant 0 : i32
    %c0_i32_0 = arith.constant 0 : i32
    return %c0_i32, %arg1 : i32, i32
  }
  func.func @transform_2(%arg0: i32, %arg1: i32) -> (i32, i32) {
    %c0_i32 = arith.constant 0 : i32
    %c0_i32_0 = arith.constant 0 : i32
    return %c0_i32, %arg1 : i32, i32
  }
  func.func @transform_3(%arg0: i32, %arg1: i32) -> (i32, i32) {
    %c0_i32 = arith.constant 0 : i32
    return %arg0, %arg1 : i32, i32
  }
}

module attributes {stable_mosaic.version = 11 : i64} {
  func.func @_conv3x3_tap_kernel(%arg0: i32, %arg1: memref<686x64xf32, #tpu.memory_space<vmem>>, %arg2: memref<9x64x64xbf16, #tpu.memory_space<vmem>>, %arg3: memref<1x64xf32, #tpu.memory_space<vmem>>, %arg4: memref<648x1xf32, #tpu.memory_space<vmem>>, %arg5: memref<648x64xbf16, #tpu.memory_space<vmem>>) attributes {dimension_semantics = [#tpu.dimension_semantics<parallel>], iteration_bounds = array<i64: 1>, scalar_prefetch = 0 : i64, scratch_operands = 0 : i64, tpu.core_type = #tpu.core_type<tc>, window_params = [{pipeline_mode = #tpu.pipeline_mode<synchronous>, transform_indices = @transform_0, window_bounds = array<i64: 686, 64>}, {transform_indices = @transform_1, window_bounds = array<i64: 9, 64, 64>}, {transform_indices = @transform_2, window_bounds = array<i64: 1, 64>}, {pipeline_mode = #tpu.pipeline_mode<synchronous>, transform_indices = @transform_3, window_bounds = array<i64: 648, 1>}, {transform_indices = @transform_4, window_bounds = array<i64: 648, 64>}]} {
    %cst = arith.constant 0.000000e+00 : f32
    %0 = vector.broadcast %cst : f32 to vector<648x64xf32>
    %c0 = arith.constant 0 : index
    %c0_0 = arith.constant 0 : index
    %1 = vector.load %arg1[%c0, %c0_0] : memref<686x64xf32, #tpu.memory_space<vmem>>, vector<648x64xf32>
    %2 = arith.truncf %1 : vector<648x64xf32> to vector<648x64xbf16>
    %c0_1 = arith.constant 0 : index
    %c0_2 = arith.constant 0 : index
    %c0_3 = arith.constant 0 : index
    %3 = vector.load %arg2[%c0_1, %c0_2, %c0_3] : memref<9x64x64xbf16, #tpu.memory_space<vmem>>, vector<1x64x64xbf16>
    %4 = vector.shape_cast %3 : vector<1x64x64xbf16> to vector<64x64xbf16>
    %cst_4 = arith.constant dense<0.000000e+00> : vector<648x64xf32>
    %5 = tpu.matmul %2, %4, %cst_4 {dimension_numbers = #tpu.dot_dimension_numbers<[1], [0], [0], [1], [0, 0, 1, 1], [], []>} : vector<648x64xbf16>, vector<64x64xbf16>, vector<648x64xf32> -> vector<648x64xf32>
    %6 = arith.addf %0, %5 : vector<648x64xf32>
    %c1 = arith.constant 1 : index
    %c0_5 = arith.constant 0 : index
    %7 = vector.load %arg1[%c1, %c0_5] : memref<686x64xf32, #tpu.memory_space<vmem>>, vector<648x64xf32>
    %8 = arith.truncf %7 : vector<648x64xf32> to vector<648x64xbf16>
    %c1_6 = arith.constant 1 : index
    %c0_7 = arith.constant 0 : index
    %c0_8 = arith.constant 0 : index
    %9 = vector.load %arg2[%c1_6, %c0_7, %c0_8] : memref<9x64x64xbf16, #tpu.memory_space<vmem>>, vector<1x64x64xbf16>
    %10 = vector.shape_cast %9 : vector<1x64x64xbf16> to vector<64x64xbf16>
    %cst_9 = arith.constant dense<0.000000e+00> : vector<648x64xf32>
    %11 = tpu.matmul %8, %10, %cst_9 {dimension_numbers = #tpu.dot_dimension_numbers<[1], [0], [0], [1], [0, 0, 1, 1], [], []>} : vector<648x64xbf16>, vector<64x64xbf16>, vector<648x64xf32> -> vector<648x64xf32>
    %12 = arith.addf %6, %11 : vector<648x64xf32>
    %c2 = arith.constant 2 : index
    %c0_10 = arith.constant 0 : index
    %13 = vector.load %arg1[%c2, %c0_10] : memref<686x64xf32, #tpu.memory_space<vmem>>, vector<648x64xf32>
    %14 = arith.truncf %13 : vector<648x64xf32> to vector<648x64xbf16>
    %c2_11 = arith.constant 2 : index
    %c0_12 = arith.constant 0 : index
    %c0_13 = arith.constant 0 : index
    %15 = vector.load %arg2[%c2_11, %c0_12, %c0_13] : memref<9x64x64xbf16, #tpu.memory_space<vmem>>, vector<1x64x64xbf16>
    %16 = vector.shape_cast %15 : vector<1x64x64xbf16> to vector<64x64xbf16>
    %cst_14 = arith.constant dense<0.000000e+00> : vector<648x64xf32>
    %17 = tpu.matmul %14, %16, %cst_14 {dimension_numbers = #tpu.dot_dimension_numbers<[1], [0], [0], [1], [0, 0, 1, 1], [], []>} : vector<648x64xbf16>, vector<64x64xbf16>, vector<648x64xf32> -> vector<648x64xf32>
    %18 = arith.addf %12, %17 : vector<648x64xf32>
    %c18 = arith.constant 18 : index
    %c0_15 = arith.constant 0 : index
    %19 = vector.load %arg1[%c18, %c0_15] : memref<686x64xf32, #tpu.memory_space<vmem>>, vector<648x64xf32>
    %20 = arith.truncf %19 : vector<648x64xf32> to vector<648x64xbf16>
    %c3 = arith.constant 3 : index
    %c0_16 = arith.constant 0 : index
    %c0_17 = arith.constant 0 : index
    %21 = vector.load %arg2[%c3, %c0_16, %c0_17] : memref<9x64x64xbf16, #tpu.memory_space<vmem>>, vector<1x64x64xbf16>
    %22 = vector.shape_cast %21 : vector<1x64x64xbf16> to vector<64x64xbf16>
    %cst_18 = arith.constant dense<0.000000e+00> : vector<648x64xf32>
    %23 = tpu.matmul %20, %22, %cst_18 {dimension_numbers = #tpu.dot_dimension_numbers<[1], [0], [0], [1], [0, 0, 1, 1], [], []>} : vector<648x64xbf16>, vector<64x64xbf16>, vector<648x64xf32> -> vector<648x64xf32>
    %24 = arith.addf %18, %23 : vector<648x64xf32>
    %c19 = arith.constant 19 : index
    %c0_19 = arith.constant 0 : index
    %25 = vector.load %arg1[%c19, %c0_19] : memref<686x64xf32, #tpu.memory_space<vmem>>, vector<648x64xf32>
    %26 = arith.truncf %25 : vector<648x64xf32> to vector<648x64xbf16>
    %c4 = arith.constant 4 : index
    %c0_20 = arith.constant 0 : index
    %c0_21 = arith.constant 0 : index
    %27 = vector.load %arg2[%c4, %c0_20, %c0_21] : memref<9x64x64xbf16, #tpu.memory_space<vmem>>, vector<1x64x64xbf16>
    %28 = vector.shape_cast %27 : vector<1x64x64xbf16> to vector<64x64xbf16>
    %cst_22 = arith.constant dense<0.000000e+00> : vector<648x64xf32>
    %29 = tpu.matmul %26, %28, %cst_22 {dimension_numbers = #tpu.dot_dimension_numbers<[1], [0], [0], [1], [0, 0, 1, 1], [], []>} : vector<648x64xbf16>, vector<64x64xbf16>, vector<648x64xf32> -> vector<648x64xf32>
    %30 = arith.addf %24, %29 : vector<648x64xf32>
    %c20 = arith.constant 20 : index
    %c0_23 = arith.constant 0 : index
    %31 = vector.load %arg1[%c20, %c0_23] : memref<686x64xf32, #tpu.memory_space<vmem>>, vector<648x64xf32>
    %32 = arith.truncf %31 : vector<648x64xf32> to vector<648x64xbf16>
    %c5 = arith.constant 5 : index
    %c0_24 = arith.constant 0 : index
    %c0_25 = arith.constant 0 : index
    %33 = vector.load %arg2[%c5, %c0_24, %c0_25] : memref<9x64x64xbf16, #tpu.memory_space<vmem>>, vector<1x64x64xbf16>
    %34 = vector.shape_cast %33 : vector<1x64x64xbf16> to vector<64x64xbf16>
    %cst_26 = arith.constant dense<0.000000e+00> : vector<648x64xf32>
    %35 = tpu.matmul %32, %34, %cst_26 {dimension_numbers = #tpu.dot_dimension_numbers<[1], [0], [0], [1], [0, 0, 1, 1], [], []>} : vector<648x64xbf16>, vector<64x64xbf16>, vector<648x64xf32> -> vector<648x64xf32>
    %36 = arith.addf %30, %35 : vector<648x64xf32>
    %c36 = arith.constant 36 : index
    %c0_27 = arith.constant 0 : index
    %37 = vector.load %arg1[%c36, %c0_27] : memref<686x64xf32, #tpu.memory_space<vmem>>, vector<648x64xf32>
    %38 = arith.truncf %37 : vector<648x64xf32> to vector<648x64xbf16>
    %c6 = arith.constant 6 : index
    %c0_28 = arith.constant 0 : index
    %c0_29 = arith.constant 0 : index
    %39 = vector.load %arg2[%c6, %c0_28, %c0_29] : memref<9x64x64xbf16, #tpu.memory_space<vmem>>, vector<1x64x64xbf16>
    %40 = vector.shape_cast %39 : vector<1x64x64xbf16> to vector<64x64xbf16>
    %cst_30 = arith.constant dense<0.000000e+00> : vector<648x64xf32>
    %41 = tpu.matmul %38, %40, %cst_30 {dimension_numbers = #tpu.dot_dimension_numbers<[1], [0], [0], [1], [0, 0, 1, 1], [], []>} : vector<648x64xbf16>, vector<64x64xbf16>, vector<648x64xf32> -> vector<648x64xf32>
    %42 = arith.addf %36, %41 : vector<648x64xf32>
    %c37 = arith.constant 37 : index
    %c0_31 = arith.constant 0 : index
    %43 = vector.load %arg1[%c37, %c0_31] : memref<686x64xf32, #tpu.memory_space<vmem>>, vector<648x64xf32>
    %44 = arith.truncf %43 : vector<648x64xf32> to vector<648x64xbf16>
    %c7 = arith.constant 7 : index
    %c0_32 = arith.constant 0 : index
    %c0_33 = arith.constant 0 : index
    %45 = vector.load %arg2[%c7, %c0_32, %c0_33] : memref<9x64x64xbf16, #tpu.memory_space<vmem>>, vector<1x64x64xbf16>
    %46 = vector.shape_cast %45 : vector<1x64x64xbf16> to vector<64x64xbf16>
    %cst_34 = arith.constant dense<0.000000e+00> : vector<648x64xf32>
    %47 = tpu.matmul %44, %46, %cst_34 {dimension_numbers = #tpu.dot_dimension_numbers<[1], [0], [0], [1], [0, 0, 1, 1], [], []>} : vector<648x64xbf16>, vector<64x64xbf16>, vector<648x64xf32> -> vector<648x64xf32>
    %48 = arith.addf %42, %47 : vector<648x64xf32>
    %c38 = arith.constant 38 : index
    %c0_35 = arith.constant 0 : index
    %49 = vector.load %arg1[%c38, %c0_35] : memref<686x64xf32, #tpu.memory_space<vmem>>, vector<648x64xf32>
    %50 = arith.truncf %49 : vector<648x64xf32> to vector<648x64xbf16>
    %c8 = arith.constant 8 : index
    %c0_36 = arith.constant 0 : index
    %c0_37 = arith.constant 0 : index
    %51 = vector.load %arg2[%c8, %c0_36, %c0_37] : memref<9x64x64xbf16, #tpu.memory_space<vmem>>, vector<1x64x64xbf16>
    %52 = vector.shape_cast %51 : vector<1x64x64xbf16> to vector<64x64xbf16>
    %cst_38 = arith.constant dense<0.000000e+00> : vector<648x64xf32>
    %53 = tpu.matmul %50, %52, %cst_38 {dimension_numbers = #tpu.dot_dimension_numbers<[1], [0], [0], [1], [0, 0, 1, 1], [], []>} : vector<648x64xbf16>, vector<64x64xbf16>, vector<648x64xf32> -> vector<648x64xf32>
    %54 = arith.addf %48, %53 : vector<648x64xf32>
    %c0_39 = arith.constant 0 : index
    %c0_40 = arith.constant 0 : index
    %55 = vector.load %arg3[%c0_39, %c0_40] : memref<1x64xf32, #tpu.memory_space<vmem>>, vector<1x64xf32>
    %56 = vector.broadcast %55 : vector<1x64xf32> to vector<648x64xf32>
    %57 = arith.addf %54, %56 : vector<648x64xf32>
    %cst_41 = arith.constant 0.000000e+00 : f32
    %58 = vector.broadcast %cst_41 : f32 to vector<648x64xf32>
    %59 = arith.maximumf %57, %58 : vector<648x64xf32>
    %c0_42 = arith.constant 0 : index
    %c0_43 = arith.constant 0 : index
    %60 = vector.load %arg4[%c0_42, %c0_43] : memref<648x1xf32, #tpu.memory_space<vmem>>, vector<648x1xf32>
    %61 = vector.broadcast %60 : vector<648x1xf32> to vector<648x64xf32>
    %62 = arith.mulf %59, %61 : vector<648x64xf32>
    %63 = arith.truncf %62 : vector<648x64xf32> to vector<648x64xbf16>
    %c0_44 = arith.constant 0 : index
    %c0_45 = arith.constant 0 : index
    %64 = vector.load %arg5[%c0_44, %c0_45] : memref<648x64xbf16, #tpu.memory_space<vmem>>, vector<648x64xbf16>
    tpu.vector_store %arg5[%c0_44, %c0_45], %63 {strides = array<i32>} : memref<648x64xbf16, #tpu.memory_space<vmem>>, vector<648x64xbf16>,
    return
  }
  func.func @transform_0(%arg0: i32) -> (i32, i32) {
    %c0_i32 = arith.constant 0 : i32
    %c0_i32_0 = arith.constant 0 : i32
    %c0_i32_1 = arith.constant 0 : i32
    return %c0_i32, %c0_i32_0 : i32, i32
  }
  func.func @transform_1(%arg0: i32) -> (i32, i32, i32) {
    %c0_i32 = arith.constant 0 : i32
    %c0_i32_0 = arith.constant 0 : i32
    %c0_i32_1 = arith.constant 0 : i32
    return %c0_i32, %c0_i32_0, %arg0 : i32, i32, i32
  }
  func.func @transform_2(%arg0: i32) -> (i32, i32) {
    %c0_i32 = arith.constant 0 : i32
    %c0_i32_0 = arith.constant 0 : i32
    return %c0_i32, %arg0 : i32, i32
  }
  func.func @transform_3(%arg0: i32) -> (i32, i32) {
    %c0_i32 = arith.constant 0 : i32
    %c0_i32_0 = arith.constant 0 : i32
    %c0_i32_1 = arith.constant 0 : i32
    return %c0_i32, %c0_i32_0 : i32, i32
  }
  func.func @transform_4(%arg0: i32) -> (i32, i32) {
    %c0_i32 = arith.constant 0 : i32
    %c0_i32_0 = arith.constant 0 : i32
    return %c0_i32, %arg0 : i32, i32
  }
}

module attributes {stable_mosaic.version = 11 : i64} {
  func.func @_conv3x3_tap_kernel(%arg0: i32, %arg1: memref<686x64xf32, #tpu.memory_space<vmem>>, %arg2: memref<9x64x64xbf16, #tpu.memory_space<vmem>>, %arg3: memref<1x64xf32, #tpu.memory_space<vmem>>, %arg4: memref<648x1xf32, #tpu.memory_space<vmem>>, %arg5: memref<648x64xbf16, #tpu.memory_space<vmem>>, %arg6: memref<648x64xbf16, #tpu.memory_space<vmem>>) attributes {dimension_semantics = [#tpu.dimension_semantics<parallel>], iteration_bounds = array<i64: 1>, scalar_prefetch = 0 : i64, scratch_operands = 0 : i64, tpu.core_type = #tpu.core_type<tc>, window_params = [{pipeline_mode = #tpu.pipeline_mode<synchronous>, transform_indices = @transform_0, window_bounds = array<i64: 686, 64>}, {transform_indices = @transform_1, window_bounds = array<i64: 9, 64, 64>}, {transform_indices = @transform_2, window_bounds = array<i64: 1, 64>}, {pipeline_mode = #tpu.pipeline_mode<synchronous>, transform_indices = @transform_3, window_bounds = array<i64: 648, 1>}, {transform_indices = @transform_4, window_bounds = array<i64: 648, 64>}, {transform_indices = @transform_5, window_bounds = array<i64: 648, 64>}]} {
    %cst = arith.constant 0.000000e+00 : f32
    %0 = vector.broadcast %cst : f32 to vector<648x64xf32>
    %c0 = arith.constant 0 : index
    %c0_0 = arith.constant 0 : index
    %1 = vector.load %arg1[%c0, %c0_0] : memref<686x64xf32, #tpu.memory_space<vmem>>, vector<648x64xf32>
    %2 = arith.truncf %1 : vector<648x64xf32> to vector<648x64xbf16>
    %c0_1 = arith.constant 0 : index
    %c0_2 = arith.constant 0 : index
    %c0_3 = arith.constant 0 : index
    %3 = vector.load %arg2[%c0_1, %c0_2, %c0_3] : memref<9x64x64xbf16, #tpu.memory_space<vmem>>, vector<1x64x64xbf16>
    %4 = vector.shape_cast %3 : vector<1x64x64xbf16> to vector<64x64xbf16>
    %cst_4 = arith.constant dense<0.000000e+00> : vector<648x64xf32>
    %5 = tpu.matmul %2, %4, %cst_4 {dimension_numbers = #tpu.dot_dimension_numbers<[1], [0], [0], [1], [0, 0, 1, 1], [], []>} : vector<648x64xbf16>, vector<64x64xbf16>, vector<648x64xf32> -> vector<648x64xf32>
    %6 = arith.addf %0, %5 : vector<648x64xf32>
    %c1 = arith.constant 1 : index
    %c0_5 = arith.constant 0 : index
    %7 = vector.load %arg1[%c1, %c0_5] : memref<686x64xf32, #tpu.memory_space<vmem>>, vector<648x64xf32>
    %8 = arith.truncf %7 : vector<648x64xf32> to vector<648x64xbf16>
    %c1_6 = arith.constant 1 : index
    %c0_7 = arith.constant 0 : index
    %c0_8 = arith.constant 0 : index
    %9 = vector.load %arg2[%c1_6, %c0_7, %c0_8] : memref<9x64x64xbf16, #tpu.memory_space<vmem>>, vector<1x64x64xbf16>
    %10 = vector.shape_cast %9 : vector<1x64x64xbf16> to vector<64x64xbf16>
    %cst_9 = arith.constant dense<0.000000e+00> : vector<648x64xf32>
    %11 = tpu.matmul %8, %10, %cst_9 {dimension_numbers = #tpu.dot_dimension_numbers<[1], [0], [0], [1], [0, 0, 1, 1], [], []>} : vector<648x64xbf16>, vector<64x64xbf16>, vector<648x64xf32> -> vector<648x64xf32>
    %12 = arith.addf %6, %11 : vector<648x64xf32>
    %c2 = arith.constant 2 : index
    %c0_10 = arith.constant 0 : index
    %13 = vector.load %arg1[%c2, %c0_10] : memref<686x64xf32, #tpu.memory_space<vmem>>, vector<648x64xf32>
    %14 = arith.truncf %13 : vector<648x64xf32> to vector<648x64xbf16>
    %c2_11 = arith.constant 2 : index
    %c0_12 = arith.constant 0 : index
    %c0_13 = arith.constant 0 : index
    %15 = vector.load %arg2[%c2_11, %c0_12, %c0_13] : memref<9x64x64xbf16, #tpu.memory_space<vmem>>, vector<1x64x64xbf16>
    %16 = vector.shape_cast %15 : vector<1x64x64xbf16> to vector<64x64xbf16>
    %cst_14 = arith.constant dense<0.000000e+00> : vector<648x64xf32>
    %17 = tpu.matmul %14, %16, %cst_14 {dimension_numbers = #tpu.dot_dimension_numbers<[1], [0], [0], [1], [0, 0, 1, 1], [], []>} : vector<648x64xbf16>, vector<64x64xbf16>, vector<648x64xf32> -> vector<648x64xf32>
    %18 = arith.addf %12, %17 : vector<648x64xf32>
    %c18 = arith.constant 18 : index
    %c0_15 = arith.constant 0 : index
    %19 = vector.load %arg1[%c18, %c0_15] : memref<686x64xf32, #tpu.memory_space<vmem>>, vector<648x64xf32>
    %20 = arith.truncf %19 : vector<648x64xf32> to vector<648x64xbf16>
    %c3 = arith.constant 3 : index
    %c0_16 = arith.constant 0 : index
    %c0_17 = arith.constant 0 : index
    %21 = vector.load %arg2[%c3, %c0_16, %c0_17] : memref<9x64x64xbf16, #tpu.memory_space<vmem>>, vector<1x64x64xbf16>
    %22 = vector.shape_cast %21 : vector<1x64x64xbf16> to vector<64x64xbf16>
    %cst_18 = arith.constant dense<0.000000e+00> : vector<648x64xf32>
    %23 = tpu.matmul %20, %22, %cst_18 {dimension_numbers = #tpu.dot_dimension_numbers<[1], [0], [0], [1], [0, 0, 1, 1], [], []>} : vector<648x64xbf16>, vector<64x64xbf16>, vector<648x64xf32> -> vector<648x64xf32>
    %24 = arith.addf %18, %23 : vector<648x64xf32>
    %c19 = arith.constant 19 : index
    %c0_19 = arith.constant 0 : index
    %25 = vector.load %arg1[%c19, %c0_19] : memref<686x64xf32, #tpu.memory_space<vmem>>, vector<648x64xf32>
    %26 = arith.truncf %25 : vector<648x64xf32> to vector<648x64xbf16>
    %c4 = arith.constant 4 : index
    %c0_20 = arith.constant 0 : index
    %c0_21 = arith.constant 0 : index
    %27 = vector.load %arg2[%c4, %c0_20, %c0_21] : memref<9x64x64xbf16, #tpu.memory_space<vmem>>, vector<1x64x64xbf16>
    %28 = vector.shape_cast %27 : vector<1x64x64xbf16> to vector<64x64xbf16>
    %cst_22 = arith.constant dense<0.000000e+00> : vector<648x64xf32>
    %29 = tpu.matmul %26, %28, %cst_22 {dimension_numbers = #tpu.dot_dimension_numbers<[1], [0], [0], [1], [0, 0, 1, 1], [], []>} : vector<648x64xbf16>, vector<64x64xbf16>, vector<648x64xf32> -> vector<648x64xf32>
    %30 = arith.addf %24, %29 : vector<648x64xf32>
    %c20 = arith.constant 20 : index
    %c0_23 = arith.constant 0 : index
    %31 = vector.load %arg1[%c20, %c0_23] : memref<686x64xf32, #tpu.memory_space<vmem>>, vector<648x64xf32>
    %32 = arith.truncf %31 : vector<648x64xf32> to vector<648x64xbf16>
    %c5 = arith.constant 5 : index
    %c0_24 = arith.constant 0 : index
    %c0_25 = arith.constant 0 : index
    %33 = vector.load %arg2[%c5, %c0_24, %c0_25] : memref<9x64x64xbf16, #tpu.memory_space<vmem>>, vector<1x64x64xbf16>
    %34 = vector.shape_cast %33 : vector<1x64x64xbf16> to vector<64x64xbf16>
    %cst_26 = arith.constant dense<0.000000e+00> : vector<648x64xf32>
    %35 = tpu.matmul %32, %34, %cst_26 {dimension_numbers = #tpu.dot_dimension_numbers<[1], [0], [0], [1], [0, 0, 1, 1], [], []>} : vector<648x64xbf16>, vector<64x64xbf16>, vector<648x64xf32> -> vector<648x64xf32>
    %36 = arith.addf %30, %35 : vector<648x64xf32>
    %c36 = arith.constant 36 : index
    %c0_27 = arith.constant 0 : index
    %37 = vector.load %arg1[%c36, %c0_27] : memref<686x64xf32, #tpu.memory_space<vmem>>, vector<648x64xf32>
    %38 = arith.truncf %37 : vector<648x64xf32> to vector<648x64xbf16>
    %c6 = arith.constant 6 : index
    %c0_28 = arith.constant 0 : index
    %c0_29 = arith.constant 0 : index
    %39 = vector.load %arg2[%c6, %c0_28, %c0_29] : memref<9x64x64xbf16, #tpu.memory_space<vmem>>, vector<1x64x64xbf16>
    %40 = vector.shape_cast %39 : vector<1x64x64xbf16> to vector<64x64xbf16>
    %cst_30 = arith.constant dense<0.000000e+00> : vector<648x64xf32>
    %41 = tpu.matmul %38, %40, %cst_30 {dimension_numbers = #tpu.dot_dimension_numbers<[1], [0], [0], [1], [0, 0, 1, 1], [], []>} : vector<648x64xbf16>, vector<64x64xbf16>, vector<648x64xf32> -> vector<648x64xf32>
    %42 = arith.addf %36, %41 : vector<648x64xf32>
    %c37 = arith.constant 37 : index
    %c0_31 = arith.constant 0 : index
    %43 = vector.load %arg1[%c37, %c0_31] : memref<686x64xf32, #tpu.memory_space<vmem>>, vector<648x64xf32>
    %44 = arith.truncf %43 : vector<648x64xf32> to vector<648x64xbf16>
    %c7 = arith.constant 7 : index
    %c0_32 = arith.constant 0 : index
    %c0_33 = arith.constant 0 : index
    %45 = vector.load %arg2[%c7, %c0_32, %c0_33] : memref<9x64x64xbf16, #tpu.memory_space<vmem>>, vector<1x64x64xbf16>
    %46 = vector.shape_cast %45 : vector<1x64x64xbf16> to vector<64x64xbf16>
    %cst_34 = arith.constant dense<0.000000e+00> : vector<648x64xf32>
    %47 = tpu.matmul %44, %46, %cst_34 {dimension_numbers = #tpu.dot_dimension_numbers<[1], [0], [0], [1], [0, 0, 1, 1], [], []>} : vector<648x64xbf16>, vector<64x64xbf16>, vector<648x64xf32> -> vector<648x64xf32>
    %48 = arith.addf %42, %47 : vector<648x64xf32>
    %c38 = arith.constant 38 : index
    %c0_35 = arith.constant 0 : index
    %49 = vector.load %arg1[%c38, %c0_35] : memref<686x64xf32, #tpu.memory_space<vmem>>, vector<648x64xf32>
    %50 = arith.truncf %49 : vector<648x64xf32> to vector<648x64xbf16>
    %c8 = arith.constant 8 : index
    %c0_36 = arith.constant 0 : index
    %c0_37 = arith.constant 0 : index
    %51 = vector.load %arg2[%c8, %c0_36, %c0_37] : memref<9x64x64xbf16, #tpu.memory_space<vmem>>, vector<1x64x64xbf16>
    %52 = vector.shape_cast %51 : vector<1x64x64xbf16> to vector<64x64xbf16>
    %cst_38 = arith.constant dense<0.000000e+00> : vector<648x64xf32>
    %53 = tpu.matmul %50, %52, %cst_38 {dimension_numbers = #tpu.dot_dimension_numbers<[1], [0], [0], [1], [0, 0, 1, 1], [], []>} : vector<648x64xbf16>, vector<64x64xbf16>, vector<648x64xf32> -> vector<648x64xf32>
    %54 = arith.addf %48, %53 : vector<648x64xf32>
    %c0_39 = arith.constant 0 : index
    %c0_40 = arith.constant 0 : index
    %55 = vector.load %arg3[%c0_39, %c0_40] : memref<1x64xf32, #tpu.memory_space<vmem>>, vector<1x64xf32>
    %56 = vector.broadcast %55 : vector<1x64xf32> to vector<648x64xf32>
    %57 = arith.addf %54, %56 : vector<648x64xf32>
    %c0_41 = arith.constant 0 : index
    %c0_42 = arith.constant 0 : index
    %58 = vector.load %arg5[%c0_41, %c0_42] : memref<648x64xbf16, #tpu.memory_space<vmem>>, vector<648x64xbf16>
    %59 = arith.extf %58 : vector<648x64xbf16> to vector<648x64xf32>
    %60 = arith.addf %57, %59 : vector<648x64xf32>
    %cst_43 = arith.constant 0.000000e+00 : f32
    %61 = vector.broadcast %cst_43 : f32 to vector<648x64xf32>
    %62 = arith.maximumf %60, %61 : vector<648x64xf32>
    %c0_44 = arith.constant 0 : index
    %c0_45 = arith.constant 0 : index
    %63 = vector.load %arg4[%c0_44, %c0_45] : memref<648x1xf32, #tpu.memory_space<vmem>>, vector<648x1xf32>
    %64 = vector.broadcast %63 : vector<648x1xf32> to vector<648x64xf32>
    %65 = arith.mulf %62, %64 : vector<648x64xf32>
    %66 = arith.truncf %65 : vector<648x64xf32> to vector<648x64xbf16>
    %c0_46 = arith.constant 0 : index
    %c0_47 = arith.constant 0 : index
    %67 = vector.load %arg6[%c0_46, %c0_47] : memref<648x64xbf16, #tpu.memory_space<vmem>>, vector<648x64xbf16>
    tpu.vector_store %arg6[%c0_46, %c0_47], %66 {strides = array<i32>} : memref<648x64xbf16, #tpu.memory_space<vmem>>, vector<648x64xbf16>,
    return
  }
  func.func @transform_0(%arg0: i32) -> (i32, i32) {
    %c0_i32 = arith.constant 0 : i32
    %c0_i32_0 = arith.constant 0 : i32
    %c0_i32_1 = arith.constant 0 : i32
    return %c0_i32, %c0_i32_0 : i32, i32
  }
  func.func @transform_1(%arg0: i32) -> (i32, i32, i32) {
    %c0_i32 = arith.constant 0 : i32
    %c0_i32_0 = arith.constant 0 : i32
    %c0_i32_1 = arith.constant 0 : i32
    return %c0_i32, %c0_i32_0, %arg0 : i32, i32, i32
  }
  func.func @transform_2(%arg0: i32) -> (i32, i32) {
    %c0_i32 = arith.constant 0 : i32
    %c0_i32_0 = arith.constant 0 : i32
    return %c0_i32, %arg0 : i32, i32
  }
  func.func @transform_3(%arg0: i32) -> (i32, i32) {
    %c0_i32 = arith.constant 0 : i32
    %c0_i32_0 = arith.constant 0 : i32
    %c0_i32_1 = arith.constant 0 : i32
    return %c0_i32, %c0_i32_0 : i32, i32
  }
  func.func @transform_4(%arg0: i32) -> (i32, i32) {
    %c0_i32 = arith.constant 0 : i32
    %c0_i32_0 = arith.constant 0 : i32
    return %c0_i32, %arg0 : i32, i32
  }
  func.func @transform_5(%arg0: i32) -> (i32, i32) {
    %c0_i32 = arith.constant 0 : i32
    %c0_i32_0 = arith.constant 0 : i32
    return %c0_i32, %arg0 : i32, i32
  }
}

module attributes {stable_mosaic.version = 11 : i64} {
  func.func @_matmul_fused_kernel(%arg0: i32, %arg1: i32, %arg2: memref<128x576xbf16, #tpu.memory_space<vmem>>, %arg3: memref<576x128xbf16, #tpu.memory_space<vmem>>, %arg4: memref<1x128xf32, #tpu.memory_space<vmem>>, %arg5: memref<128x128xbf16, #tpu.memory_space<vmem>>) attributes {dimension_semantics = [#tpu.dimension_semantics<parallel>, #tpu.dimension_semantics<parallel>], iteration_bounds = array<i64: 1, 1>, scalar_prefetch = 0 : i64, scratch_operands = 0 : i64, tpu.core_type = #tpu.core_type<tc>, window_params = [{transform_indices = @transform_0, window_bounds = array<i64: 128, 576>}, {transform_indices = @transform_1, window_bounds = array<i64: 576, 128>}, {transform_indices = @transform_2, window_bounds = array<i64: 1, 128>}, {transform_indices = @transform_3, window_bounds = array<i64: 128, 128>}]} {
    %c0 = arith.constant 0 : index
    %c0_0 = arith.constant 0 : index
    %0 = vector.load %arg2[%c0, %c0_0] : memref<128x576xbf16, #tpu.memory_space<vmem>>, vector<128x576xbf16>
    %c0_1 = arith.constant 0 : index
    %c0_2 = arith.constant 0 : index
    %1 = vector.load %arg3[%c0_1, %c0_2] : memref<576x128xbf16, #tpu.memory_space<vmem>>, vector<576x128xbf16>
    %cst = arith.constant dense<0.000000e+00> : vector<128x128xf32>
    %2 = tpu.matmul %0, %1, %cst {dimension_numbers = #tpu.dot_dimension_numbers<[1], [0], [0], [1], [0, 0, 1, 1], [], []>} : vector<128x576xbf16>, vector<576x128xbf16>, vector<128x128xf32> -> vector<128x128xf32>
    %c0_3 = arith.constant 0 : index
    %c0_4 = arith.constant 0 : index
    %3 = vector.load %arg4[%c0_3, %c0_4] : memref<1x128xf32, #tpu.memory_space<vmem>>, vector<1x128xf32>
    %4 = vector.broadcast %3 : vector<1x128xf32> to vector<128x128xf32>
    %5 = arith.addf %2, %4 : vector<128x128xf32>
    %cst_5 = arith.constant 0.000000e+00 : f32
    %6 = vector.broadcast %cst_5 : f32 to vector<128x128xf32>
    %7 = arith.maximumf %5, %6 : vector<128x128xf32>
    %8 = arith.truncf %7 : vector<128x128xf32> to vector<128x128xbf16>
    %c0_6 = arith.constant 0 : index
    %c0_7 = arith.constant 0 : index
    %9 = vector.load %arg5[%c0_6, %c0_7] : memref<128x128xbf16, #tpu.memory_space<vmem>>, vector<128x128xbf16>
    tpu.vector_store %arg5[%c0_6, %c0_7], %8 {strides = array<i32>} : memref<128x128xbf16, #tpu.memory_space<vmem>>, vector<128x128xbf16>,
    return
  }
  func.func @transform_0(%arg0: i32, %arg1: i32) -> (i32, i32) {
    %c0_i32 = arith.constant 0 : i32
    %c0_i32_0 = arith.constant 0 : i32
    return %arg0, %c0_i32 : i32, i32
  }
  func.func @transform_1(%arg0: i32, %arg1: i32) -> (i32, i32) {
    %c0_i32 = arith.constant 0 : i32
    %c0_i32_0 = arith.constant 0 : i32
    return %c0_i32, %arg1 : i32, i32
  }
  func.func @transform_2(%arg0: i32, %arg1: i32) -> (i32, i32) {
    %c0_i32 = arith.constant 0 : i32
    %c0_i32_0 = arith.constant 0 : i32
    return %c0_i32, %arg1 : i32, i32
  }
  func.func @transform_3(%arg0: i32, %arg1: i32) -> (i32, i32) {
    %c0_i32 = arith.constant 0 : i32
    return %arg0, %arg1 : i32, i32
  }
}

module attributes {stable_mosaic.version = 11 : i64} {
  func.func @_matmul_fused_kernel(%arg0: i32, %arg1: i32, %arg2: memref<128x64xbf16, #tpu.memory_space<vmem>>, %arg3: memref<64x128xbf16, #tpu.memory_space<vmem>>, %arg4: memref<1x128xf32, #tpu.memory_space<vmem>>, %arg5: memref<128x128xbf16, #tpu.memory_space<vmem>>) attributes {dimension_semantics = [#tpu.dimension_semantics<parallel>, #tpu.dimension_semantics<parallel>], iteration_bounds = array<i64: 1, 1>, scalar_prefetch = 0 : i64, scratch_operands = 0 : i64, tpu.core_type = #tpu.core_type<tc>, window_params = [{transform_indices = @transform_0, window_bounds = array<i64: 128, 64>}, {transform_indices = @transform_1, window_bounds = array<i64: 64, 128>}, {transform_indices = @transform_2, window_bounds = array<i64: 1, 128>}, {transform_indices = @transform_3, window_bounds = array<i64: 128, 128>}]} {
    %c0 = arith.constant 0 : index
    %c0_0 = arith.constant 0 : index
    %0 = vector.load %arg2[%c0, %c0_0] : memref<128x64xbf16, #tpu.memory_space<vmem>>, vector<128x64xbf16>
    %c0_1 = arith.constant 0 : index
    %c0_2 = arith.constant 0 : index
    %1 = vector.load %arg3[%c0_1, %c0_2] : memref<64x128xbf16, #tpu.memory_space<vmem>>, vector<64x128xbf16>
    %cst = arith.constant dense<0.000000e+00> : vector<128x128xf32>
    %2 = tpu.matmul %0, %1, %cst {dimension_numbers = #tpu.dot_dimension_numbers<[1], [0], [0], [1], [0, 0, 1, 1], [], []>} : vector<128x64xbf16>, vector<64x128xbf16>, vector<128x128xf32> -> vector<128x128xf32>
    %c0_3 = arith.constant 0 : index
    %c0_4 = arith.constant 0 : index
    %3 = vector.load %arg4[%c0_3, %c0_4] : memref<1x128xf32, #tpu.memory_space<vmem>>, vector<1x128xf32>
    %4 = vector.broadcast %3 : vector<1x128xf32> to vector<128x128xf32>
    %5 = arith.addf %2, %4 : vector<128x128xf32>
    %6 = arith.truncf %5 : vector<128x128xf32> to vector<128x128xbf16>
    %c0_5 = arith.constant 0 : index
    %c0_6 = arith.constant 0 : index
    %7 = vector.load %arg5[%c0_5, %c0_6] : memref<128x128xbf16, #tpu.memory_space<vmem>>, vector<128x128xbf16>
    tpu.vector_store %arg5[%c0_5, %c0_6], %6 {strides = array<i32>} : memref<128x128xbf16, #tpu.memory_space<vmem>>, vector<128x128xbf16>,
    return
  }
  func.func @transform_0(%arg0: i32, %arg1: i32) -> (i32, i32) {
    %c0_i32 = arith.constant 0 : i32
    %c0_i32_0 = arith.constant 0 : i32
    return %arg0, %c0_i32 : i32, i32
  }
  func.func @transform_1(%arg0: i32, %arg1: i32) -> (i32, i32) {
    %c0_i32 = arith.constant 0 : i32
    %c0_i32_0 = arith.constant 0 : i32
    return %c0_i32, %arg1 : i32, i32
  }
  func.func @transform_2(%arg0: i32, %arg1: i32) -> (i32, i32) {
    %c0_i32 = arith.constant 0 : i32
    %c0_i32_0 = arith.constant 0 : i32
    return %c0_i32, %arg1 : i32, i32
  }
  func.func @transform_3(%arg0: i32, %arg1: i32) -> (i32, i32) {
    %c0_i32 = arith.constant 0 : i32
    return %arg0, %arg1 : i32, i32
  }
}

module attributes {stable_mosaic.version = 11 : i64} {
  func.func @_conv3x3_tap_kernel(%arg0: i32, %arg1: memref<222x128xf32, #tpu.memory_space<vmem>>, %arg2: memref<9x128x128xbf16, #tpu.memory_space<vmem>>, %arg3: memref<1x128xf32, #tpu.memory_space<vmem>>, %arg4: memref<200x1xf32, #tpu.memory_space<vmem>>, %arg5: memref<200x128xbf16, #tpu.memory_space<vmem>>, %arg6: memref<200x128xbf16, #tpu.memory_space<vmem>>) attributes {dimension_semantics = [#tpu.dimension_semantics<parallel>], iteration_bounds = array<i64: 1>, scalar_prefetch = 0 : i64, scratch_operands = 0 : i64, tpu.core_type = #tpu.core_type<tc>, window_params = [{pipeline_mode = #tpu.pipeline_mode<synchronous>, transform_indices = @transform_0, window_bounds = array<i64: 222, 128>}, {transform_indices = @transform_1, window_bounds = array<i64: 9, 128, 128>}, {transform_indices = @transform_2, window_bounds = array<i64: 1, 128>}, {pipeline_mode = #tpu.pipeline_mode<synchronous>, transform_indices = @transform_3, window_bounds = array<i64: 200, 1>}, {transform_indices = @transform_4, window_bounds = array<i64: 200, 128>}, {transform_indices = @transform_5, window_bounds = array<i64: 200, 128>}]} {
    %cst = arith.constant 0.000000e+00 : f32
    %0 = vector.broadcast %cst : f32 to vector<200x128xf32>
    %c0 = arith.constant 0 : index
    %c0_0 = arith.constant 0 : index
    %1 = vector.load %arg1[%c0, %c0_0] : memref<222x128xf32, #tpu.memory_space<vmem>>, vector<200x128xf32>
    %2 = arith.truncf %1 : vector<200x128xf32> to vector<200x128xbf16>
    %c0_1 = arith.constant 0 : index
    %c0_2 = arith.constant 0 : index
    %c0_3 = arith.constant 0 : index
    %3 = vector.load %arg2[%c0_1, %c0_2, %c0_3] : memref<9x128x128xbf16, #tpu.memory_space<vmem>>, vector<1x128x128xbf16>
    %4 = vector.shape_cast %3 : vector<1x128x128xbf16> to vector<128x128xbf16>
    %cst_4 = arith.constant dense<0.000000e+00> : vector<200x128xf32>
    %5 = tpu.matmul %2, %4, %cst_4 {dimension_numbers = #tpu.dot_dimension_numbers<[1], [0], [0], [1], [0, 0, 1, 1], [], []>} : vector<200x128xbf16>, vector<128x128xbf16>, vector<200x128xf32> -> vector<200x128xf32>
    %6 = arith.addf %0, %5 : vector<200x128xf32>
    %c1 = arith.constant 1 : index
    %c0_5 = arith.constant 0 : index
    %7 = vector.load %arg1[%c1, %c0_5] : memref<222x128xf32, #tpu.memory_space<vmem>>, vector<200x128xf32>
    %8 = arith.truncf %7 : vector<200x128xf32> to vector<200x128xbf16>
    %c1_6 = arith.constant 1 : index
    %c0_7 = arith.constant 0 : index
    %c0_8 = arith.constant 0 : index
    %9 = vector.load %arg2[%c1_6, %c0_7, %c0_8] : memref<9x128x128xbf16, #tpu.memory_space<vmem>>, vector<1x128x128xbf16>
    %10 = vector.shape_cast %9 : vector<1x128x128xbf16> to vector<128x128xbf16>
    %cst_9 = arith.constant dense<0.000000e+00> : vector<200x128xf32>
    %11 = tpu.matmul %8, %10, %cst_9 {dimension_numbers = #tpu.dot_dimension_numbers<[1], [0], [0], [1], [0, 0, 1, 1], [], []>} : vector<200x128xbf16>, vector<128x128xbf16>, vector<200x128xf32> -> vector<200x128xf32>
    %12 = arith.addf %6, %11 : vector<200x128xf32>
    %c2 = arith.constant 2 : index
    %c0_10 = arith.constant 0 : index
    %13 = vector.load %arg1[%c2, %c0_10] : memref<222x128xf32, #tpu.memory_space<vmem>>, vector<200x128xf32>
    %14 = arith.truncf %13 : vector<200x128xf32> to vector<200x128xbf16>
    %c2_11 = arith.constant 2 : index
    %c0_12 = arith.constant 0 : index
    %c0_13 = arith.constant 0 : index
    %15 = vector.load %arg2[%c2_11, %c0_12, %c0_13] : memref<9x128x128xbf16, #tpu.memory_space<vmem>>, vector<1x128x128xbf16>
    %16 = vector.shape_cast %15 : vector<1x128x128xbf16> to vector<128x128xbf16>
    %cst_14 = arith.constant dense<0.000000e+00> : vector<200x128xf32>
    %17 = tpu.matmul %14, %16, %cst_14 {dimension_numbers = #tpu.dot_dimension_numbers<[1], [0], [0], [1], [0, 0, 1, 1], [], []>} : vector<200x128xbf16>, vector<128x128xbf16>, vector<200x128xf32> -> vector<200x128xf32>
    %18 = arith.addf %12, %17 : vector<200x128xf32>
    %c10 = arith.constant 10 : index
    %c0_15 = arith.constant 0 : index
    %19 = vector.load %arg1[%c10, %c0_15] : memref<222x128xf32, #tpu.memory_space<vmem>>, vector<200x128xf32>
    %20 = arith.truncf %19 : vector<200x128xf32> to vector<200x128xbf16>
    %c3 = arith.constant 3 : index
    %c0_16 = arith.constant 0 : index
    %c0_17 = arith.constant 0 : index
    %21 = vector.load %arg2[%c3, %c0_16, %c0_17] : memref<9x128x128xbf16, #tpu.memory_space<vmem>>, vector<1x128x128xbf16>
    %22 = vector.shape_cast %21 : vector<1x128x128xbf16> to vector<128x128xbf16>
    %cst_18 = arith.constant dense<0.000000e+00> : vector<200x128xf32>
    %23 = tpu.matmul %20, %22, %cst_18 {dimension_numbers = #tpu.dot_dimension_numbers<[1], [0], [0], [1], [0, 0, 1, 1], [], []>} : vector<200x128xbf16>, vector<128x128xbf16>, vector<200x128xf32> -> vector<200x128xf32>
    %24 = arith.addf %18, %23 : vector<200x128xf32>
    %c11 = arith.constant 11 : index
    %c0_19 = arith.constant 0 : index
    %25 = vector.load %arg1[%c11, %c0_19] : memref<222x128xf32, #tpu.memory_space<vmem>>, vector<200x128xf32>
    %26 = arith.truncf %25 : vector<200x128xf32> to vector<200x128xbf16>
    %c4 = arith.constant 4 : index
    %c0_20 = arith.constant 0 : index
    %c0_21 = arith.constant 0 : index
    %27 = vector.load %arg2[%c4, %c0_20, %c0_21] : memref<9x128x128xbf16, #tpu.memory_space<vmem>>, vector<1x128x128xbf16>
    %28 = vector.shape_cast %27 : vector<1x128x128xbf16> to vector<128x128xbf16>
    %cst_22 = arith.constant dense<0.000000e+00> : vector<200x128xf32>
    %29 = tpu.matmul %26, %28, %cst_22 {dimension_numbers = #tpu.dot_dimension_numbers<[1], [0], [0], [1], [0, 0, 1, 1], [], []>} : vector<200x128xbf16>, vector<128x128xbf16>, vector<200x128xf32> -> vector<200x128xf32>
    %30 = arith.addf %24, %29 : vector<200x128xf32>
    %c12 = arith.constant 12 : index
    %c0_23 = arith.constant 0 : index
    %31 = vector.load %arg1[%c12, %c0_23] : memref<222x128xf32, #tpu.memory_space<vmem>>, vector<200x128xf32>
    %32 = arith.truncf %31 : vector<200x128xf32> to vector<200x128xbf16>
    %c5 = arith.constant 5 : index
    %c0_24 = arith.constant 0 : index
    %c0_25 = arith.constant 0 : index
    %33 = vector.load %arg2[%c5, %c0_24, %c0_25] : memref<9x128x128xbf16, #tpu.memory_space<vmem>>, vector<1x128x128xbf16>
    %34 = vector.shape_cast %33 : vector<1x128x128xbf16> to vector<128x128xbf16>
    %cst_26 = arith.constant dense<0.000000e+00> : vector<200x128xf32>
    %35 = tpu.matmul %32, %34, %cst_26 {dimension_numbers = #tpu.dot_dimension_numbers<[1], [0], [0], [1], [0, 0, 1, 1], [], []>} : vector<200x128xbf16>, vector<128x128xbf16>, vector<200x128xf32> -> vector<200x128xf32>
    %36 = arith.addf %30, %35 : vector<200x128xf32>
    %c20 = arith.constant 20 : index
    %c0_27 = arith.constant 0 : index
    %37 = vector.load %arg1[%c20, %c0_27] : memref<222x128xf32, #tpu.memory_space<vmem>>, vector<200x128xf32>
    %38 = arith.truncf %37 : vector<200x128xf32> to vector<200x128xbf16>
    %c6 = arith.constant 6 : index
    %c0_28 = arith.constant 0 : index
    %c0_29 = arith.constant 0 : index
    %39 = vector.load %arg2[%c6, %c0_28, %c0_29] : memref<9x128x128xbf16, #tpu.memory_space<vmem>>, vector<1x128x128xbf16>
    %40 = vector.shape_cast %39 : vector<1x128x128xbf16> to vector<128x128xbf16>
    %cst_30 = arith.constant dense<0.000000e+00> : vector<200x128xf32>
    %41 = tpu.matmul %38, %40, %cst_30 {dimension_numbers = #tpu.dot_dimension_numbers<[1], [0], [0], [1], [0, 0, 1, 1], [], []>} : vector<200x128xbf16>, vector<128x128xbf16>, vector<200x128xf32> -> vector<200x128xf32>
    %42 = arith.addf %36, %41 : vector<200x128xf32>
    %c21 = arith.constant 21 : index
    %c0_31 = arith.constant 0 : index
    %43 = vector.load %arg1[%c21, %c0_31] : memref<222x128xf32, #tpu.memory_space<vmem>>, vector<200x128xf32>
    %44 = arith.truncf %43 : vector<200x128xf32> to vector<200x128xbf16>
    %c7 = arith.constant 7 : index
    %c0_32 = arith.constant 0 : index
    %c0_33 = arith.constant 0 : index
    %45 = vector.load %arg2[%c7, %c0_32, %c0_33] : memref<9x128x128xbf16, #tpu.memory_space<vmem>>, vector<1x128x128xbf16>
    %46 = vector.shape_cast %45 : vector<1x128x128xbf16> to vector<128x128xbf16>
    %cst_34 = arith.constant dense<0.000000e+00> : vector<200x128xf32>
    %47 = tpu.matmul %44, %46, %cst_34 {dimension_numbers = #tpu.dot_dimension_numbers<[1], [0], [0], [1], [0, 0, 1, 1], [], []>} : vector<200x128xbf16>, vector<128x128xbf16>, vector<200x128xf32> -> vector<200x128xf32>
    %48 = arith.addf %42, %47 : vector<200x128xf32>
    %c22 = arith.constant 22 : index
    %c0_35 = arith.constant 0 : index
    %49 = vector.load %arg1[%c22, %c0_35] : memref<222x128xf32, #tpu.memory_space<vmem>>, vector<200x128xf32>
    %50 = arith.truncf %49 : vector<200x128xf32> to vector<200x128xbf16>
    %c8 = arith.constant 8 : index
    %c0_36 = arith.constant 0 : index
    %c0_37 = arith.constant 0 : index
    %51 = vector.load %arg2[%c8, %c0_36, %c0_37] : memref<9x128x128xbf16, #tpu.memory_space<vmem>>, vector<1x128x128xbf16>
    %52 = vector.shape_cast %51 : vector<1x128x128xbf16> to vector<128x128xbf16>
    %cst_38 = arith.constant dense<0.000000e+00> : vector<200x128xf32>
    %53 = tpu.matmul %50, %52, %cst_38 {dimension_numbers = #tpu.dot_dimension_numbers<[1], [0], [0], [1], [0, 0, 1, 1], [], []>} : vector<200x128xbf16>, vector<128x128xbf16>, vector<200x128xf32> -> vector<200x128xf32>
    %54 = arith.addf %48, %53 : vector<200x128xf32>
    %c0_39 = arith.constant 0 : index
    %c0_40 = arith.constant 0 : index
    %55 = vector.load %arg3[%c0_39, %c0_40] : memref<1x128xf32, #tpu.memory_space<vmem>>, vector<1x128xf32>
    %56 = vector.broadcast %55 : vector<1x128xf32> to vector<200x128xf32>
    %57 = arith.addf %54, %56 : vector<200x128xf32>
    %c0_41 = arith.constant 0 : index
    %c0_42 = arith.constant 0 : index
    %58 = vector.load %arg5[%c0_41, %c0_42] : memref<200x128xbf16, #tpu.memory_space<vmem>>, vector<200x128xbf16>
    %59 = arith.extf %58 : vector<200x128xbf16> to vector<200x128xf32>
    %60 = arith.addf %57, %59 : vector<200x128xf32>
    %cst_43 = arith.constant 0.000000e+00 : f32
    %61 = vector.broadcast %cst_43 : f32 to vector<200x128xf32>
    %62 = arith.maximumf %60, %61 : vector<200x128xf32>
    %c0_44 = arith.constant 0 : index
    %c0_45 = arith.constant 0 : index
    %63 = vector.load %arg4[%c0_44, %c0_45] : memref<200x1xf32, #tpu.memory_space<vmem>>, vector<200x1xf32>
    %64 = vector.broadcast %63 : vector<200x1xf32> to vector<200x128xf32>
    %65 = arith.mulf %62, %64 : vector<200x128xf32>
    %66 = arith.truncf %65 : vector<200x128xf32> to vector<200x128xbf16>
    %c0_46 = arith.constant 0 : index
    %c0_47 = arith.constant 0 : index
    %67 = vector.load %arg6[%c0_46, %c0_47] : memref<200x128xbf16, #tpu.memory_space<vmem>>, vector<200x128xbf16>
    tpu.vector_store %arg6[%c0_46, %c0_47], %66 {strides = array<i32>} : memref<200x128xbf16, #tpu.memory_space<vmem>>, vector<200x128xbf16>,
    return
  }
  func.func @transform_0(%arg0: i32) -> (i32, i32) {
    %c0_i32 = arith.constant 0 : i32
    %c0_i32_0 = arith.constant 0 : i32
    %c0_i32_1 = arith.constant 0 : i32
    return %c0_i32, %c0_i32_0 : i32, i32
  }
  func.func @transform_1(%arg0: i32) -> (i32, i32, i32) {
    %c0_i32 = arith.constant 0 : i32
    %c0_i32_0 = arith.constant 0 : i32
    %c0_i32_1 = arith.constant 0 : i32
    return %c0_i32, %c0_i32_0, %arg0 : i32, i32, i32
  }
  func.func @transform_2(%arg0: i32) -> (i32, i32) {
    %c0_i32 = arith.constant 0 : i32
    %c0_i32_0 = arith.constant 0 : i32
    return %c0_i32, %arg0 : i32, i32
  }
  func.func @transform_3(%arg0: i32) -> (i32, i32) {
    %c0_i32 = arith.constant 0 : i32
    %c0_i32_0 = arith.constant 0 : i32
    %c0_i32_1 = arith.constant 0 : i32
    return %c0_i32, %c0_i32_0 : i32, i32
  }
  func.func @transform_4(%arg0: i32) -> (i32, i32) {
    %c0_i32 = arith.constant 0 : i32
    %c0_i32_0 = arith.constant 0 : i32
    return %c0_i32, %arg0 : i32, i32
  }
  func.func @transform_5(%arg0: i32) -> (i32, i32) {
    %c0_i32 = arith.constant 0 : i32
    %c0_i32_0 = arith.constant 0 : i32
    return %c0_i32, %arg0 : i32, i32
  }
}

module attributes {stable_mosaic.version = 11 : i64} {
  func.func @_conv3x3_tap_kernel(%arg0: i32, %arg1: memref<222x128xf32, #tpu.memory_space<vmem>>, %arg2: memref<9x128x128xbf16, #tpu.memory_space<vmem>>, %arg3: memref<1x128xf32, #tpu.memory_space<vmem>>, %arg4: memref<200x1xf32, #tpu.memory_space<vmem>>, %arg5: memref<200x128xbf16, #tpu.memory_space<vmem>>) attributes {dimension_semantics = [#tpu.dimension_semantics<parallel>], iteration_bounds = array<i64: 1>, scalar_prefetch = 0 : i64, scratch_operands = 0 : i64, tpu.core_type = #tpu.core_type<tc>, window_params = [{pipeline_mode = #tpu.pipeline_mode<synchronous>, transform_indices = @transform_0, window_bounds = array<i64: 222, 128>}, {transform_indices = @transform_1, window_bounds = array<i64: 9, 128, 128>}, {transform_indices = @transform_2, window_bounds = array<i64: 1, 128>}, {pipeline_mode = #tpu.pipeline_mode<synchronous>, transform_indices = @transform_3, window_bounds = array<i64: 200, 1>}, {transform_indices = @transform_4, window_bounds = array<i64: 200, 128>}]} {
    %cst = arith.constant 0.000000e+00 : f32
    %0 = vector.broadcast %cst : f32 to vector<200x128xf32>
    %c0 = arith.constant 0 : index
    %c0_0 = arith.constant 0 : index
    %1 = vector.load %arg1[%c0, %c0_0] : memref<222x128xf32, #tpu.memory_space<vmem>>, vector<200x128xf32>
    %2 = arith.truncf %1 : vector<200x128xf32> to vector<200x128xbf16>
    %c0_1 = arith.constant 0 : index
    %c0_2 = arith.constant 0 : index
    %c0_3 = arith.constant 0 : index
    %3 = vector.load %arg2[%c0_1, %c0_2, %c0_3] : memref<9x128x128xbf16, #tpu.memory_space<vmem>>, vector<1x128x128xbf16>
    %4 = vector.shape_cast %3 : vector<1x128x128xbf16> to vector<128x128xbf16>
    %cst_4 = arith.constant dense<0.000000e+00> : vector<200x128xf32>
    %5 = tpu.matmul %2, %4, %cst_4 {dimension_numbers = #tpu.dot_dimension_numbers<[1], [0], [0], [1], [0, 0, 1, 1], [], []>} : vector<200x128xbf16>, vector<128x128xbf16>, vector<200x128xf32> -> vector<200x128xf32>
    %6 = arith.addf %0, %5 : vector<200x128xf32>
    %c1 = arith.constant 1 : index
    %c0_5 = arith.constant 0 : index
    %7 = vector.load %arg1[%c1, %c0_5] : memref<222x128xf32, #tpu.memory_space<vmem>>, vector<200x128xf32>
    %8 = arith.truncf %7 : vector<200x128xf32> to vector<200x128xbf16>
    %c1_6 = arith.constant 1 : index
    %c0_7 = arith.constant 0 : index
    %c0_8 = arith.constant 0 : index
    %9 = vector.load %arg2[%c1_6, %c0_7, %c0_8] : memref<9x128x128xbf16, #tpu.memory_space<vmem>>, vector<1x128x128xbf16>
    %10 = vector.shape_cast %9 : vector<1x128x128xbf16> to vector<128x128xbf16>
    %cst_9 = arith.constant dense<0.000000e+00> : vector<200x128xf32>
    %11 = tpu.matmul %8, %10, %cst_9 {dimension_numbers = #tpu.dot_dimension_numbers<[1], [0], [0], [1], [0, 0, 1, 1], [], []>} : vector<200x128xbf16>, vector<128x128xbf16>, vector<200x128xf32> -> vector<200x128xf32>
    %12 = arith.addf %6, %11 : vector<200x128xf32>
    %c2 = arith.constant 2 : index
    %c0_10 = arith.constant 0 : index
    %13 = vector.load %arg1[%c2, %c0_10] : memref<222x128xf32, #tpu.memory_space<vmem>>, vector<200x128xf32>
    %14 = arith.truncf %13 : vector<200x128xf32> to vector<200x128xbf16>
    %c2_11 = arith.constant 2 : index
    %c0_12 = arith.constant 0 : index
    %c0_13 = arith.constant 0 : index
    %15 = vector.load %arg2[%c2_11, %c0_12, %c0_13] : memref<9x128x128xbf16, #tpu.memory_space<vmem>>, vector<1x128x128xbf16>
    %16 = vector.shape_cast %15 : vector<1x128x128xbf16> to vector<128x128xbf16>
    %cst_14 = arith.constant dense<0.000000e+00> : vector<200x128xf32>
    %17 = tpu.matmul %14, %16, %cst_14 {dimension_numbers = #tpu.dot_dimension_numbers<[1], [0], [0], [1], [0, 0, 1, 1], [], []>} : vector<200x128xbf16>, vector<128x128xbf16>, vector<200x128xf32> -> vector<200x128xf32>
    %18 = arith.addf %12, %17 : vector<200x128xf32>
    %c10 = arith.constant 10 : index
    %c0_15 = arith.constant 0 : index
    %19 = vector.load %arg1[%c10, %c0_15] : memref<222x128xf32, #tpu.memory_space<vmem>>, vector<200x128xf32>
    %20 = arith.truncf %19 : vector<200x128xf32> to vector<200x128xbf16>
    %c3 = arith.constant 3 : index
    %c0_16 = arith.constant 0 : index
    %c0_17 = arith.constant 0 : index
    %21 = vector.load %arg2[%c3, %c0_16, %c0_17] : memref<9x128x128xbf16, #tpu.memory_space<vmem>>, vector<1x128x128xbf16>
    %22 = vector.shape_cast %21 : vector<1x128x128xbf16> to vector<128x128xbf16>
    %cst_18 = arith.constant dense<0.000000e+00> : vector<200x128xf32>
    %23 = tpu.matmul %20, %22, %cst_18 {dimension_numbers = #tpu.dot_dimension_numbers<[1], [0], [0], [1], [0, 0, 1, 1], [], []>} : vector<200x128xbf16>, vector<128x128xbf16>, vector<200x128xf32> -> vector<200x128xf32>
    %24 = arith.addf %18, %23 : vector<200x128xf32>
    %c11 = arith.constant 11 : index
    %c0_19 = arith.constant 0 : index
    %25 = vector.load %arg1[%c11, %c0_19] : memref<222x128xf32, #tpu.memory_space<vmem>>, vector<200x128xf32>
    %26 = arith.truncf %25 : vector<200x128xf32> to vector<200x128xbf16>
    %c4 = arith.constant 4 : index
    %c0_20 = arith.constant 0 : index
    %c0_21 = arith.constant 0 : index
    %27 = vector.load %arg2[%c4, %c0_20, %c0_21] : memref<9x128x128xbf16, #tpu.memory_space<vmem>>, vector<1x128x128xbf16>
    %28 = vector.shape_cast %27 : vector<1x128x128xbf16> to vector<128x128xbf16>
    %cst_22 = arith.constant dense<0.000000e+00> : vector<200x128xf32>
    %29 = tpu.matmul %26, %28, %cst_22 {dimension_numbers = #tpu.dot_dimension_numbers<[1], [0], [0], [1], [0, 0, 1, 1], [], []>} : vector<200x128xbf16>, vector<128x128xbf16>, vector<200x128xf32> -> vector<200x128xf32>
    %30 = arith.addf %24, %29 : vector<200x128xf32>
    %c12 = arith.constant 12 : index
    %c0_23 = arith.constant 0 : index
    %31 = vector.load %arg1[%c12, %c0_23] : memref<222x128xf32, #tpu.memory_space<vmem>>, vector<200x128xf32>
    %32 = arith.truncf %31 : vector<200x128xf32> to vector<200x128xbf16>
    %c5 = arith.constant 5 : index
    %c0_24 = arith.constant 0 : index
    %c0_25 = arith.constant 0 : index
    %33 = vector.load %arg2[%c5, %c0_24, %c0_25] : memref<9x128x128xbf16, #tpu.memory_space<vmem>>, vector<1x128x128xbf16>
    %34 = vector.shape_cast %33 : vector<1x128x128xbf16> to vector<128x128xbf16>
    %cst_26 = arith.constant dense<0.000000e+00> : vector<200x128xf32>
    %35 = tpu.matmul %32, %34, %cst_26 {dimension_numbers = #tpu.dot_dimension_numbers<[1], [0], [0], [1], [0, 0, 1, 1], [], []>} : vector<200x128xbf16>, vector<128x128xbf16>, vector<200x128xf32> -> vector<200x128xf32>
    %36 = arith.addf %30, %35 : vector<200x128xf32>
    %c20 = arith.constant 20 : index
    %c0_27 = arith.constant 0 : index
    %37 = vector.load %arg1[%c20, %c0_27] : memref<222x128xf32, #tpu.memory_space<vmem>>, vector<200x128xf32>
    %38 = arith.truncf %37 : vector<200x128xf32> to vector<200x128xbf16>
    %c6 = arith.constant 6 : index
    %c0_28 = arith.constant 0 : index
    %c0_29 = arith.constant 0 : index
    %39 = vector.load %arg2[%c6, %c0_28, %c0_29] : memref<9x128x128xbf16, #tpu.memory_space<vmem>>, vector<1x128x128xbf16>
    %40 = vector.shape_cast %39 : vector<1x128x128xbf16> to vector<128x128xbf16>
    %cst_30 = arith.constant dense<0.000000e+00> : vector<200x128xf32>
    %41 = tpu.matmul %38, %40, %cst_30 {dimension_numbers = #tpu.dot_dimension_numbers<[1], [0], [0], [1], [0, 0, 1, 1], [], []>} : vector<200x128xbf16>, vector<128x128xbf16>, vector<200x128xf32> -> vector<200x128xf32>
    %42 = arith.addf %36, %41 : vector<200x128xf32>
    %c21 = arith.constant 21 : index
    %c0_31 = arith.constant 0 : index
    %43 = vector.load %arg1[%c21, %c0_31] : memref<222x128xf32, #tpu.memory_space<vmem>>, vector<200x128xf32>
    %44 = arith.truncf %43 : vector<200x128xf32> to vector<200x128xbf16>
    %c7 = arith.constant 7 : index
    %c0_32 = arith.constant 0 : index
    %c0_33 = arith.constant 0 : index
    %45 = vector.load %arg2[%c7, %c0_32, %c0_33] : memref<9x128x128xbf16, #tpu.memory_space<vmem>>, vector<1x128x128xbf16>
    %46 = vector.shape_cast %45 : vector<1x128x128xbf16> to vector<128x128xbf16>
    %cst_34 = arith.constant dense<0.000000e+00> : vector<200x128xf32>
    %47 = tpu.matmul %44, %46, %cst_34 {dimension_numbers = #tpu.dot_dimension_numbers<[1], [0], [0], [1], [0, 0, 1, 1], [], []>} : vector<200x128xbf16>, vector<128x128xbf16>, vector<200x128xf32> -> vector<200x128xf32>
    %48 = arith.addf %42, %47 : vector<200x128xf32>
    %c22 = arith.constant 22 : index
    %c0_35 = arith.constant 0 : index
    %49 = vector.load %arg1[%c22, %c0_35] : memref<222x128xf32, #tpu.memory_space<vmem>>, vector<200x128xf32>
    %50 = arith.truncf %49 : vector<200x128xf32> to vector<200x128xbf16>
    %c8 = arith.constant 8 : index
    %c0_36 = arith.constant 0 : index
    %c0_37 = arith.constant 0 : index
    %51 = vector.load %arg2[%c8, %c0_36, %c0_37] : memref<9x128x128xbf16, #tpu.memory_space<vmem>>, vector<1x128x128xbf16>
    %52 = vector.shape_cast %51 : vector<1x128x128xbf16> to vector<128x128xbf16>
    %cst_38 = arith.constant dense<0.000000e+00> : vector<200x128xf32>
    %53 = tpu.matmul %50, %52, %cst_38 {dimension_numbers = #tpu.dot_dimension_numbers<[1], [0], [0], [1], [0, 0, 1, 1], [], []>} : vector<200x128xbf16>, vector<128x128xbf16>, vector<200x128xf32> -> vector<200x128xf32>
    %54 = arith.addf %48, %53 : vector<200x128xf32>
    %c0_39 = arith.constant 0 : index
    %c0_40 = arith.constant 0 : index
    %55 = vector.load %arg3[%c0_39, %c0_40] : memref<1x128xf32, #tpu.memory_space<vmem>>, vector<1x128xf32>
    %56 = vector.broadcast %55 : vector<1x128xf32> to vector<200x128xf32>
    %57 = arith.addf %54, %56 : vector<200x128xf32>
    %cst_41 = arith.constant 0.000000e+00 : f32
    %58 = vector.broadcast %cst_41 : f32 to vector<200x128xf32>
    %59 = arith.maximumf %57, %58 : vector<200x128xf32>
    %c0_42 = arith.constant 0 : index
    %c0_43 = arith.constant 0 : index
    %60 = vector.load %arg4[%c0_42, %c0_43] : memref<200x1xf32, #tpu.memory_space<vmem>>, vector<200x1xf32>
    %61 = vector.broadcast %60 : vector<200x1xf32> to vector<200x128xf32>
    %62 = arith.mulf %59, %61 : vector<200x128xf32>
    %63 = arith.truncf %62 : vector<200x128xf32> to vector<200x128xbf16>
    %c0_44 = arith.constant 0 : index
    %c0_45 = arith.constant 0 : index
    %64 = vector.load %arg5[%c0_44, %c0_45] : memref<200x128xbf16, #tpu.memory_space<vmem>>, vector<200x128xbf16>
    tpu.vector_store %arg5[%c0_44, %c0_45], %63 {strides = array<i32>} : memref<200x128xbf16, #tpu.memory_space<vmem>>, vector<200x128xbf16>,
    return
  }
  func.func @transform_0(%arg0: i32) -> (i32, i32) {
    %c0_i32 = arith.constant 0 : i32
    %c0_i32_0 = arith.constant 0 : i32
    %c0_i32_1 = arith.constant 0 : i32
    return %c0_i32, %c0_i32_0 : i32, i32
  }
  func.func @transform_1(%arg0: i32) -> (i32, i32, i32) {
    %c0_i32 = arith.constant 0 : i32
    %c0_i32_0 = arith.constant 0 : i32
    %c0_i32_1 = arith.constant 0 : i32
    return %c0_i32, %c0_i32_0, %arg0 : i32, i32, i32
  }
  func.func @transform_2(%arg0: i32) -> (i32, i32) {
    %c0_i32 = arith.constant 0 : i32
    %c0_i32_0 = arith.constant 0 : i32
    return %c0_i32, %arg0 : i32, i32
  }
  func.func @transform_3(%arg0: i32) -> (i32, i32) {
    %c0_i32 = arith.constant 0 : i32
    %c0_i32_0 = arith.constant 0 : i32
    %c0_i32_1 = arith.constant 0 : i32
    return %c0_i32, %c0_i32_0 : i32, i32
  }
  func.func @transform_4(%arg0: i32) -> (i32, i32) {
    %c0_i32 = arith.constant 0 : i32
    %c0_i32_0 = arith.constant 0 : i32
    return %c0_i32, %arg0 : i32, i32
  }
}

module attributes {stable_mosaic.version = 11 : i64} {
  func.func @_matmul_fused_kernel(%arg0: i32, %arg1: i32, %arg2: memref<32x1152xbf16, #tpu.memory_space<vmem>>, %arg3: memref<1152x256xbf16, #tpu.memory_space<vmem>>, %arg4: memref<1x256xf32, #tpu.memory_space<vmem>>, %arg5: memref<32x256xbf16, #tpu.memory_space<vmem>>) attributes {dimension_semantics = [#tpu.dimension_semantics<parallel>, #tpu.dimension_semantics<parallel>], iteration_bounds = array<i64: 1, 1>, scalar_prefetch = 0 : i64, scratch_operands = 0 : i64, tpu.core_type = #tpu.core_type<tc>, window_params = [{transform_indices = @transform_0, window_bounds = array<i64: 32, 1152>}, {transform_indices = @transform_1, window_bounds = array<i64: 1152, 256>}, {transform_indices = @transform_2, window_bounds = array<i64: 1, 256>}, {transform_indices = @transform_3, window_bounds = array<i64: 32, 256>}]} {
    %c0 = arith.constant 0 : index
    %c0_0 = arith.constant 0 : index
    %0 = vector.load %arg2[%c0, %c0_0] : memref<32x1152xbf16, #tpu.memory_space<vmem>>, vector<32x1152xbf16>
    %c0_1 = arith.constant 0 : index
    %c0_2 = arith.constant 0 : index
    %1 = vector.load %arg3[%c0_1, %c0_2] : memref<1152x256xbf16, #tpu.memory_space<vmem>>, vector<1152x256xbf16>
    %cst = arith.constant dense<0.000000e+00> : vector<32x256xf32>
    %2 = tpu.matmul %0, %1, %cst {dimension_numbers = #tpu.dot_dimension_numbers<[1], [0], [0], [1], [0, 0, 1, 1], [], []>} : vector<32x1152xbf16>, vector<1152x256xbf16>, vector<32x256xf32> -> vector<32x256xf32>
    %c0_3 = arith.constant 0 : index
    %c0_4 = arith.constant 0 : index
    %3 = vector.load %arg4[%c0_3, %c0_4] : memref<1x256xf32, #tpu.memory_space<vmem>>, vector<1x256xf32>
    %4 = vector.broadcast %3 : vector<1x256xf32> to vector<32x256xf32>
    %5 = arith.addf %2, %4 : vector<32x256xf32>
    %cst_5 = arith.constant 0.000000e+00 : f32
    %6 = vector.broadcast %cst_5 : f32 to vector<32x256xf32>
    %7 = arith.maximumf %5, %6 : vector<32x256xf32>
    %8 = arith.truncf %7 : vector<32x256xf32> to vector<32x256xbf16>
    %c0_6 = arith.constant 0 : index
    %c0_7 = arith.constant 0 : index
    %9 = vector.load %arg5[%c0_6, %c0_7] : memref<32x256xbf16, #tpu.memory_space<vmem>>, vector<32x256xbf16>
    tpu.vector_store %arg5[%c0_6, %c0_7], %8 {strides = array<i32>} : memref<32x256xbf16, #tpu.memory_space<vmem>>, vector<32x256xbf16>,
    return
  }
  func.func @transform_0(%arg0: i32, %arg1: i32) -> (i32, i32) {
    %c0_i32 = arith.constant 0 : i32
    %c0_i32_0 = arith.constant 0 : i32
    return %arg0, %c0_i32 : i32, i32
  }
  func.func @transform_1(%arg0: i32, %arg1: i32) -> (i32, i32) {
    %c0_i32 = arith.constant 0 : i32
    %c0_i32_0 = arith.constant 0 : i32
    return %c0_i32, %arg1 : i32, i32
  }
  func.func @transform_2(%arg0: i32, %arg1: i32) -> (i32, i32) {
    %c0_i32 = arith.constant 0 : i32
    %c0_i32_0 = arith.constant 0 : i32
    return %c0_i32, %arg1 : i32, i32
  }
  func.func @transform_3(%arg0: i32, %arg1: i32) -> (i32, i32) {
    %c0_i32 = arith.constant 0 : i32
    return %arg0, %arg1 : i32, i32
  }
}

module attributes {stable_mosaic.version = 11 : i64} {
  func.func @_matmul_fused_kernel(%arg0: i32, %arg1: i32, %arg2: memref<32x128xbf16, #tpu.memory_space<vmem>>, %arg3: memref<128x256xbf16, #tpu.memory_space<vmem>>, %arg4: memref<1x256xf32, #tpu.memory_space<vmem>>, %arg5: memref<32x256xbf16, #tpu.memory_space<vmem>>) attributes {dimension_semantics = [#tpu.dimension_semantics<parallel>, #tpu.dimension_semantics<parallel>], iteration_bounds = array<i64: 1, 1>, scalar_prefetch = 0 : i64, scratch_operands = 0 : i64, tpu.core_type = #tpu.core_type<tc>, window_params = [{transform_indices = @transform_0, window_bounds = array<i64: 32, 128>}, {transform_indices = @transform_1, window_bounds = array<i64: 128, 256>}, {transform_indices = @transform_2, window_bounds = array<i64: 1, 256>}, {transform_indices = @transform_3, window_bounds = array<i64: 32, 256>}]} {
    %c0 = arith.constant 0 : index
    %c0_0 = arith.constant 0 : index
    %0 = vector.load %arg2[%c0, %c0_0] : memref<32x128xbf16, #tpu.memory_space<vmem>>, vector<32x128xbf16>
    %c0_1 = arith.constant 0 : index
    %c0_2 = arith.constant 0 : index
    %1 = vector.load %arg3[%c0_1, %c0_2] : memref<128x256xbf16, #tpu.memory_space<vmem>>, vector<128x256xbf16>
    %cst = arith.constant dense<0.000000e+00> : vector<32x256xf32>
    %2 = tpu.matmul %0, %1, %cst {dimension_numbers = #tpu.dot_dimension_numbers<[1], [0], [0], [1], [0, 0, 1, 1], [], []>} : vector<32x128xbf16>, vector<128x256xbf16>, vector<32x256xf32> -> vector<32x256xf32>
    %c0_3 = arith.constant 0 : index
    %c0_4 = arith.constant 0 : index
    %3 = vector.load %arg4[%c0_3, %c0_4] : memref<1x256xf32, #tpu.memory_space<vmem>>, vector<1x256xf32>
    %4 = vector.broadcast %3 : vector<1x256xf32> to vector<32x256xf32>
    %5 = arith.addf %2, %4 : vector<32x256xf32>
    %6 = arith.truncf %5 : vector<32x256xf32> to vector<32x256xbf16>
    %c0_5 = arith.constant 0 : index
    %c0_6 = arith.constant 0 : index
    %7 = vector.load %arg5[%c0_5, %c0_6] : memref<32x256xbf16, #tpu.memory_space<vmem>>, vector<32x256xbf16>
    tpu.vector_store %arg5[%c0_5, %c0_6], %6 {strides = array<i32>} : memref<32x256xbf16, #tpu.memory_space<vmem>>, vector<32x256xbf16>,
    return
  }
  func.func @transform_0(%arg0: i32, %arg1: i32) -> (i32, i32) {
    %c0_i32 = arith.constant 0 : i32
    %c0_i32_0 = arith.constant 0 : i32
    return %arg0, %c0_i32 : i32, i32
  }
  func.func @transform_1(%arg0: i32, %arg1: i32) -> (i32, i32) {
    %c0_i32 = arith.constant 0 : i32
    %c0_i32_0 = arith.constant 0 : i32
    return %c0_i32, %arg1 : i32, i32
  }
  func.func @transform_2(%arg0: i32, %arg1: i32) -> (i32, i32) {
    %c0_i32 = arith.constant 0 : i32
    %c0_i32_0 = arith.constant 0 : i32
    return %c0_i32, %arg1 : i32, i32
  }
  func.func @transform_3(%arg0: i32, %arg1: i32) -> (i32, i32) {
    %c0_i32 = arith.constant 0 : i32
    return %arg0, %arg1 : i32, i32
  }
}

module attributes {stable_mosaic.version = 11 : i64} {
  func.func @_conv3x3_tap_kernel(%arg0: i32, %arg1: memref<86x256xf32, #tpu.memory_space<vmem>>, %arg2: memref<9x256x256xbf16, #tpu.memory_space<vmem>>, %arg3: memref<1x256xf32, #tpu.memory_space<vmem>>, %arg4: memref<72x1xf32, #tpu.memory_space<vmem>>, %arg5: memref<72x256xbf16, #tpu.memory_space<vmem>>, %arg6: memref<72x256xbf16, #tpu.memory_space<vmem>>) attributes {dimension_semantics = [#tpu.dimension_semantics<parallel>], iteration_bounds = array<i64: 1>, scalar_prefetch = 0 : i64, scratch_operands = 0 : i64, tpu.core_type = #tpu.core_type<tc>, window_params = [{pipeline_mode = #tpu.pipeline_mode<synchronous>, transform_indices = @transform_0, window_bounds = array<i64: 86, 256>}, {transform_indices = @transform_1, window_bounds = array<i64: 9, 256, 256>}, {transform_indices = @transform_2, window_bounds = array<i64: 1, 256>}, {pipeline_mode = #tpu.pipeline_mode<synchronous>, transform_indices = @transform_3, window_bounds = array<i64: 72, 1>}, {transform_indices = @transform_4, window_bounds = array<i64: 72, 256>}, {transform_indices = @transform_5, window_bounds = array<i64: 72, 256>}]} {
    %cst = arith.constant 0.000000e+00 : f32
    %0 = vector.broadcast %cst : f32 to vector<72x256xf32>
    %c0 = arith.constant 0 : index
    %c0_0 = arith.constant 0 : index
    %1 = vector.load %arg1[%c0, %c0_0] : memref<86x256xf32, #tpu.memory_space<vmem>>, vector<72x256xf32>
    %2 = arith.truncf %1 : vector<72x256xf32> to vector<72x256xbf16>
    %c0_1 = arith.constant 0 : index
    %c0_2 = arith.constant 0 : index
    %c0_3 = arith.constant 0 : index
    %3 = vector.load %arg2[%c0_1, %c0_2, %c0_3] : memref<9x256x256xbf16, #tpu.memory_space<vmem>>, vector<1x256x256xbf16>
    %4 = vector.shape_cast %3 : vector<1x256x256xbf16> to vector<256x256xbf16>
    %cst_4 = arith.constant dense<0.000000e+00> : vector<72x256xf32>
    %5 = tpu.matmul %2, %4, %cst_4 {dimension_numbers = #tpu.dot_dimension_numbers<[1], [0], [0], [1], [0, 0, 1, 1], [], []>} : vector<72x256xbf16>, vector<256x256xbf16>, vector<72x256xf32> -> vector<72x256xf32>
    %6 = arith.addf %0, %5 : vector<72x256xf32>
    %c1 = arith.constant 1 : index
    %c0_5 = arith.constant 0 : index
    %7 = vector.load %arg1[%c1, %c0_5] : memref<86x256xf32, #tpu.memory_space<vmem>>, vector<72x256xf32>
    %8 = arith.truncf %7 : vector<72x256xf32> to vector<72x256xbf16>
    %c1_6 = arith.constant 1 : index
    %c0_7 = arith.constant 0 : index
    %c0_8 = arith.constant 0 : index
    %9 = vector.load %arg2[%c1_6, %c0_7, %c0_8] : memref<9x256x256xbf16, #tpu.memory_space<vmem>>, vector<1x256x256xbf16>
    %10 = vector.shape_cast %9 : vector<1x256x256xbf16> to vector<256x256xbf16>
    %cst_9 = arith.constant dense<0.000000e+00> : vector<72x256xf32>
    %11 = tpu.matmul %8, %10, %cst_9 {dimension_numbers = #tpu.dot_dimension_numbers<[1], [0], [0], [1], [0, 0, 1, 1], [], []>} : vector<72x256xbf16>, vector<256x256xbf16>, vector<72x256xf32> -> vector<72x256xf32>
    %12 = arith.addf %6, %11 : vector<72x256xf32>
    %c2 = arith.constant 2 : index
    %c0_10 = arith.constant 0 : index
    %13 = vector.load %arg1[%c2, %c0_10] : memref<86x256xf32, #tpu.memory_space<vmem>>, vector<72x256xf32>
    %14 = arith.truncf %13 : vector<72x256xf32> to vector<72x256xbf16>
    %c2_11 = arith.constant 2 : index
    %c0_12 = arith.constant 0 : index
    %c0_13 = arith.constant 0 : index
    %15 = vector.load %arg2[%c2_11, %c0_12, %c0_13] : memref<9x256x256xbf16, #tpu.memory_space<vmem>>, vector<1x256x256xbf16>
    %16 = vector.shape_cast %15 : vector<1x256x256xbf16> to vector<256x256xbf16>
    %cst_14 = arith.constant dense<0.000000e+00> : vector<72x256xf32>
    %17 = tpu.matmul %14, %16, %cst_14 {dimension_numbers = #tpu.dot_dimension_numbers<[1], [0], [0], [1], [0, 0, 1, 1], [], []>} : vector<72x256xbf16>, vector<256x256xbf16>, vector<72x256xf32> -> vector<72x256xf32>
    %18 = arith.addf %12, %17 : vector<72x256xf32>
    %c6 = arith.constant 6 : index
    %c0_15 = arith.constant 0 : index
    %19 = vector.load %arg1[%c6, %c0_15] : memref<86x256xf32, #tpu.memory_space<vmem>>, vector<72x256xf32>
    %20 = arith.truncf %19 : vector<72x256xf32> to vector<72x256xbf16>
    %c3 = arith.constant 3 : index
    %c0_16 = arith.constant 0 : index
    %c0_17 = arith.constant 0 : index
    %21 = vector.load %arg2[%c3, %c0_16, %c0_17] : memref<9x256x256xbf16, #tpu.memory_space<vmem>>, vector<1x256x256xbf16>
    %22 = vector.shape_cast %21 : vector<1x256x256xbf16> to vector<256x256xbf16>
    %cst_18 = arith.constant dense<0.000000e+00> : vector<72x256xf32>
    %23 = tpu.matmul %20, %22, %cst_18 {dimension_numbers = #tpu.dot_dimension_numbers<[1], [0], [0], [1], [0, 0, 1, 1], [], []>} : vector<72x256xbf16>, vector<256x256xbf16>, vector<72x256xf32> -> vector<72x256xf32>
    %24 = arith.addf %18, %23 : vector<72x256xf32>
    %c7 = arith.constant 7 : index
    %c0_19 = arith.constant 0 : index
    %25 = vector.load %arg1[%c7, %c0_19] : memref<86x256xf32, #tpu.memory_space<vmem>>, vector<72x256xf32>
    %26 = arith.truncf %25 : vector<72x256xf32> to vector<72x256xbf16>
    %c4 = arith.constant 4 : index
    %c0_20 = arith.constant 0 : index
    %c0_21 = arith.constant 0 : index
    %27 = vector.load %arg2[%c4, %c0_20, %c0_21] : memref<9x256x256xbf16, #tpu.memory_space<vmem>>, vector<1x256x256xbf16>
    %28 = vector.shape_cast %27 : vector<1x256x256xbf16> to vector<256x256xbf16>
    %cst_22 = arith.constant dense<0.000000e+00> : vector<72x256xf32>
    %29 = tpu.matmul %26, %28, %cst_22 {dimension_numbers = #tpu.dot_dimension_numbers<[1], [0], [0], [1], [0, 0, 1, 1], [], []>} : vector<72x256xbf16>, vector<256x256xbf16>, vector<72x256xf32> -> vector<72x256xf32>
    %30 = arith.addf %24, %29 : vector<72x256xf32>
    %c8 = arith.constant 8 : index
    %c0_23 = arith.constant 0 : index
    %31 = vector.load %arg1[%c8, %c0_23] : memref<86x256xf32, #tpu.memory_space<vmem>>, vector<72x256xf32>
    %32 = arith.truncf %31 : vector<72x256xf32> to vector<72x256xbf16>
    %c5 = arith.constant 5 : index
    %c0_24 = arith.constant 0 : index
    %c0_25 = arith.constant 0 : index
    %33 = vector.load %arg2[%c5, %c0_24, %c0_25] : memref<9x256x256xbf16, #tpu.memory_space<vmem>>, vector<1x256x256xbf16>
    %34 = vector.shape_cast %33 : vector<1x256x256xbf16> to vector<256x256xbf16>
    %cst_26 = arith.constant dense<0.000000e+00> : vector<72x256xf32>
    %35 = tpu.matmul %32, %34, %cst_26 {dimension_numbers = #tpu.dot_dimension_numbers<[1], [0], [0], [1], [0, 0, 1, 1], [], []>} : vector<72x256xbf16>, vector<256x256xbf16>, vector<72x256xf32> -> vector<72x256xf32>
    %36 = arith.addf %30, %35 : vector<72x256xf32>
    %c12 = arith.constant 12 : index
    %c0_27 = arith.constant 0 : index
    %37 = vector.load %arg1[%c12, %c0_27] : memref<86x256xf32, #tpu.memory_space<vmem>>, vector<72x256xf32>
    %38 = arith.truncf %37 : vector<72x256xf32> to vector<72x256xbf16>
    %c6_28 = arith.constant 6 : index
    %c0_29 = arith.constant 0 : index
    %c0_30 = arith.constant 0 : index
    %39 = vector.load %arg2[%c6_28, %c0_29, %c0_30] : memref<9x256x256xbf16, #tpu.memory_space<vmem>>, vector<1x256x256xbf16>
    %40 = vector.shape_cast %39 : vector<1x256x256xbf16> to vector<256x256xbf16>
    %cst_31 = arith.constant dense<0.000000e+00> : vector<72x256xf32>
    %41 = tpu.matmul %38, %40, %cst_31 {dimension_numbers = #tpu.dot_dimension_numbers<[1], [0], [0], [1], [0, 0, 1, 1], [], []>} : vector<72x256xbf16>, vector<256x256xbf16>, vector<72x256xf32> -> vector<72x256xf32>
    %42 = arith.addf %36, %41 : vector<72x256xf32>
    %c13 = arith.constant 13 : index
    %c0_32 = arith.constant 0 : index
    %43 = vector.load %arg1[%c13, %c0_32] : memref<86x256xf32, #tpu.memory_space<vmem>>, vector<72x256xf32>
    %44 = arith.truncf %43 : vector<72x256xf32> to vector<72x256xbf16>
    %c7_33 = arith.constant 7 : index
    %c0_34 = arith.constant 0 : index
    %c0_35 = arith.constant 0 : index
    %45 = vector.load %arg2[%c7_33, %c0_34, %c0_35] : memref<9x256x256xbf16, #tpu.memory_space<vmem>>, vector<1x256x256xbf16>
    %46 = vector.shape_cast %45 : vector<1x256x256xbf16> to vector<256x256xbf16>
    %cst_36 = arith.constant dense<0.000000e+00> : vector<72x256xf32>
    %47 = tpu.matmul %44, %46, %cst_36 {dimension_numbers = #tpu.dot_dimension_numbers<[1], [0], [0], [1], [0, 0, 1, 1], [], []>} : vector<72x256xbf16>, vector<256x256xbf16>, vector<72x256xf32> -> vector<72x256xf32>
    %48 = arith.addf %42, %47 : vector<72x256xf32>
    %c14 = arith.constant 14 : index
    %c0_37 = arith.constant 0 : index
    %49 = vector.load %arg1[%c14, %c0_37] : memref<86x256xf32, #tpu.memory_space<vmem>>, vector<72x256xf32>
    %50 = arith.truncf %49 : vector<72x256xf32> to vector<72x256xbf16>
    %c8_38 = arith.constant 8 : index
    %c0_39 = arith.constant 0 : index
    %c0_40 = arith.constant 0 : index
    %51 = vector.load %arg2[%c8_38, %c0_39, %c0_40] : memref<9x256x256xbf16, #tpu.memory_space<vmem>>, vector<1x256x256xbf16>
    %52 = vector.shape_cast %51 : vector<1x256x256xbf16> to vector<256x256xbf16>
    %cst_41 = arith.constant dense<0.000000e+00> : vector<72x256xf32>
    %53 = tpu.matmul %50, %52, %cst_41 {dimension_numbers = #tpu.dot_dimension_numbers<[1], [0], [0], [1], [0, 0, 1, 1], [], []>} : vector<72x256xbf16>, vector<256x256xbf16>, vector<72x256xf32> -> vector<72x256xf32>
    %54 = arith.addf %48, %53 : vector<72x256xf32>
    %c0_42 = arith.constant 0 : index
    %c0_43 = arith.constant 0 : index
    %55 = vector.load %arg3[%c0_42, %c0_43] : memref<1x256xf32, #tpu.memory_space<vmem>>, vector<1x256xf32>
    %56 = vector.broadcast %55 : vector<1x256xf32> to vector<72x256xf32>
    %57 = arith.addf %54, %56 : vector<72x256xf32>
    %c0_44 = arith.constant 0 : index
    %c0_45 = arith.constant 0 : index
    %58 = vector.load %arg5[%c0_44, %c0_45] : memref<72x256xbf16, #tpu.memory_space<vmem>>, vector<72x256xbf16>
    %59 = arith.extf %58 : vector<72x256xbf16> to vector<72x256xf32>
    %60 = arith.addf %57, %59 : vector<72x256xf32>
    %cst_46 = arith.constant 0.000000e+00 : f32
    %61 = vector.broadcast %cst_46 : f32 to vector<72x256xf32>
    %62 = arith.maximumf %60, %61 : vector<72x256xf32>
    %c0_47 = arith.constant 0 : index
    %c0_48 = arith.constant 0 : index
    %63 = vector.load %arg4[%c0_47, %c0_48] : memref<72x1xf32, #tpu.memory_space<vmem>>, vector<72x1xf32>
    %64 = vector.broadcast %63 : vector<72x1xf32> to vector<72x256xf32>
    %65 = arith.mulf %62, %64 : vector<72x256xf32>
    %66 = arith.truncf %65 : vector<72x256xf32> to vector<72x256xbf16>
    %c0_49 = arith.constant 0 : index
    %c0_50 = arith.constant 0 : index
    %67 = vector.load %arg6[%c0_49, %c0_50] : memref<72x256xbf16, #tpu.memory_space<vmem>>, vector<72x256xbf16>
    tpu.vector_store %arg6[%c0_49, %c0_50], %66 {strides = array<i32>} : memref<72x256xbf16, #tpu.memory_space<vmem>>, vector<72x256xbf16>,
    return
  }
  func.func @transform_0(%arg0: i32) -> (i32, i32) {
    %c0_i32 = arith.constant 0 : i32
    %c0_i32_0 = arith.constant 0 : i32
    %c0_i32_1 = arith.constant 0 : i32
    return %c0_i32, %c0_i32_0 : i32, i32
  }
  func.func @transform_1(%arg0: i32) -> (i32, i32, i32) {
    %c0_i32 = arith.constant 0 : i32
    %c0_i32_0 = arith.constant 0 : i32
    %c0_i32_1 = arith.constant 0 : i32
    return %c0_i32, %c0_i32_0, %arg0 : i32, i32, i32
  }
  func.func @transform_2(%arg0: i32) -> (i32, i32) {
    %c0_i32 = arith.constant 0 : i32
    %c0_i32_0 = arith.constant 0 : i32
    return %c0_i32, %arg0 : i32, i32
  }
  func.func @transform_3(%arg0: i32) -> (i32, i32) {
    %c0_i32 = arith.constant 0 : i32
    %c0_i32_0 = arith.constant 0 : i32
    %c0_i32_1 = arith.constant 0 : i32
    return %c0_i32, %c0_i32_0 : i32, i32
  }
  func.func @transform_4(%arg0: i32) -> (i32, i32) {
    %c0_i32 = arith.constant 0 : i32
    %c0_i32_0 = arith.constant 0 : i32
    return %c0_i32, %arg0 : i32, i32
  }
  func.func @transform_5(%arg0: i32) -> (i32, i32) {
    %c0_i32 = arith.constant 0 : i32
    %c0_i32_0 = arith.constant 0 : i32
    return %c0_i32, %arg0 : i32, i32
  }
}

module attributes {stable_mosaic.version = 11 : i64} {
  func.func @_conv3x3_tap_kernel(%arg0: i32, %arg1: memref<86x256xf32, #tpu.memory_space<vmem>>, %arg2: memref<9x256x256xbf16, #tpu.memory_space<vmem>>, %arg3: memref<1x256xf32, #tpu.memory_space<vmem>>, %arg4: memref<72x1xf32, #tpu.memory_space<vmem>>, %arg5: memref<72x256xbf16, #tpu.memory_space<vmem>>) attributes {dimension_semantics = [#tpu.dimension_semantics<parallel>], iteration_bounds = array<i64: 1>, scalar_prefetch = 0 : i64, scratch_operands = 0 : i64, tpu.core_type = #tpu.core_type<tc>, window_params = [{pipeline_mode = #tpu.pipeline_mode<synchronous>, transform_indices = @transform_0, window_bounds = array<i64: 86, 256>}, {transform_indices = @transform_1, window_bounds = array<i64: 9, 256, 256>}, {transform_indices = @transform_2, window_bounds = array<i64: 1, 256>}, {pipeline_mode = #tpu.pipeline_mode<synchronous>, transform_indices = @transform_3, window_bounds = array<i64: 72, 1>}, {transform_indices = @transform_4, window_bounds = array<i64: 72, 256>}]} {
    %cst = arith.constant 0.000000e+00 : f32
    %0 = vector.broadcast %cst : f32 to vector<72x256xf32>
    %c0 = arith.constant 0 : index
    %c0_0 = arith.constant 0 : index
    %1 = vector.load %arg1[%c0, %c0_0] : memref<86x256xf32, #tpu.memory_space<vmem>>, vector<72x256xf32>
    %2 = arith.truncf %1 : vector<72x256xf32> to vector<72x256xbf16>
    %c0_1 = arith.constant 0 : index
    %c0_2 = arith.constant 0 : index
    %c0_3 = arith.constant 0 : index
    %3 = vector.load %arg2[%c0_1, %c0_2, %c0_3] : memref<9x256x256xbf16, #tpu.memory_space<vmem>>, vector<1x256x256xbf16>
    %4 = vector.shape_cast %3 : vector<1x256x256xbf16> to vector<256x256xbf16>
    %cst_4 = arith.constant dense<0.000000e+00> : vector<72x256xf32>
    %5 = tpu.matmul %2, %4, %cst_4 {dimension_numbers = #tpu.dot_dimension_numbers<[1], [0], [0], [1], [0, 0, 1, 1], [], []>} : vector<72x256xbf16>, vector<256x256xbf16>, vector<72x256xf32> -> vector<72x256xf32>
    %6 = arith.addf %0, %5 : vector<72x256xf32>
    %c1 = arith.constant 1 : index
    %c0_5 = arith.constant 0 : index
    %7 = vector.load %arg1[%c1, %c0_5] : memref<86x256xf32, #tpu.memory_space<vmem>>, vector<72x256xf32>
    %8 = arith.truncf %7 : vector<72x256xf32> to vector<72x256xbf16>
    %c1_6 = arith.constant 1 : index
    %c0_7 = arith.constant 0 : index
    %c0_8 = arith.constant 0 : index
    %9 = vector.load %arg2[%c1_6, %c0_7, %c0_8] : memref<9x256x256xbf16, #tpu.memory_space<vmem>>, vector<1x256x256xbf16>
    %10 = vector.shape_cast %9 : vector<1x256x256xbf16> to vector<256x256xbf16>
    %cst_9 = arith.constant dense<0.000000e+00> : vector<72x256xf32>
    %11 = tpu.matmul %8, %10, %cst_9 {dimension_numbers = #tpu.dot_dimension_numbers<[1], [0], [0], [1], [0, 0, 1, 1], [], []>} : vector<72x256xbf16>, vector<256x256xbf16>, vector<72x256xf32> -> vector<72x256xf32>
    %12 = arith.addf %6, %11 : vector<72x256xf32>
    %c2 = arith.constant 2 : index
    %c0_10 = arith.constant 0 : index
    %13 = vector.load %arg1[%c2, %c0_10] : memref<86x256xf32, #tpu.memory_space<vmem>>, vector<72x256xf32>
    %14 = arith.truncf %13 : vector<72x256xf32> to vector<72x256xbf16>
    %c2_11 = arith.constant 2 : index
    %c0_12 = arith.constant 0 : index
    %c0_13 = arith.constant 0 : index
    %15 = vector.load %arg2[%c2_11, %c0_12, %c0_13] : memref<9x256x256xbf16, #tpu.memory_space<vmem>>, vector<1x256x256xbf16>
    %16 = vector.shape_cast %15 : vector<1x256x256xbf16> to vector<256x256xbf16>
    %cst_14 = arith.constant dense<0.000000e+00> : vector<72x256xf32>
    %17 = tpu.matmul %14, %16, %cst_14 {dimension_numbers = #tpu.dot_dimension_numbers<[1], [0], [0], [1], [0, 0, 1, 1], [], []>} : vector<72x256xbf16>, vector<256x256xbf16>, vector<72x256xf32> -> vector<72x256xf32>
    %18 = arith.addf %12, %17 : vector<72x256xf32>
    %c6 = arith.constant 6 : index
    %c0_15 = arith.constant 0 : index
    %19 = vector.load %arg1[%c6, %c0_15] : memref<86x256xf32, #tpu.memory_space<vmem>>, vector<72x256xf32>
    %20 = arith.truncf %19 : vector<72x256xf32> to vector<72x256xbf16>
    %c3 = arith.constant 3 : index
    %c0_16 = arith.constant 0 : index
    %c0_17 = arith.constant 0 : index
    %21 = vector.load %arg2[%c3, %c0_16, %c0_17] : memref<9x256x256xbf16, #tpu.memory_space<vmem>>, vector<1x256x256xbf16>
    %22 = vector.shape_cast %21 : vector<1x256x256xbf16> to vector<256x256xbf16>
    %cst_18 = arith.constant dense<0.000000e+00> : vector<72x256xf32>
    %23 = tpu.matmul %20, %22, %cst_18 {dimension_numbers = #tpu.dot_dimension_numbers<[1], [0], [0], [1], [0, 0, 1, 1], [], []>} : vector<72x256xbf16>, vector<256x256xbf16>, vector<72x256xf32> -> vector<72x256xf32>
    %24 = arith.addf %18, %23 : vector<72x256xf32>
    %c7 = arith.constant 7 : index
    %c0_19 = arith.constant 0 : index
    %25 = vector.load %arg1[%c7, %c0_19] : memref<86x256xf32, #tpu.memory_space<vmem>>, vector<72x256xf32>
    %26 = arith.truncf %25 : vector<72x256xf32> to vector<72x256xbf16>
    %c4 = arith.constant 4 : index
    %c0_20 = arith.constant 0 : index
    %c0_21 = arith.constant 0 : index
    %27 = vector.load %arg2[%c4, %c0_20, %c0_21] : memref<9x256x256xbf16, #tpu.memory_space<vmem>>, vector<1x256x256xbf16>
    %28 = vector.shape_cast %27 : vector<1x256x256xbf16> to vector<256x256xbf16>
    %cst_22 = arith.constant dense<0.000000e+00> : vector<72x256xf32>
    %29 = tpu.matmul %26, %28, %cst_22 {dimension_numbers = #tpu.dot_dimension_numbers<[1], [0], [0], [1], [0, 0, 1, 1], [], []>} : vector<72x256xbf16>, vector<256x256xbf16>, vector<72x256xf32> -> vector<72x256xf32>
    %30 = arith.addf %24, %29 : vector<72x256xf32>
    %c8 = arith.constant 8 : index
    %c0_23 = arith.constant 0 : index
    %31 = vector.load %arg1[%c8, %c0_23] : memref<86x256xf32, #tpu.memory_space<vmem>>, vector<72x256xf32>
    %32 = arith.truncf %31 : vector<72x256xf32> to vector<72x256xbf16>
    %c5 = arith.constant 5 : index
    %c0_24 = arith.constant 0 : index
    %c0_25 = arith.constant 0 : index
    %33 = vector.load %arg2[%c5, %c0_24, %c0_25] : memref<9x256x256xbf16, #tpu.memory_space<vmem>>, vector<1x256x256xbf16>
    %34 = vector.shape_cast %33 : vector<1x256x256xbf16> to vector<256x256xbf16>
    %cst_26 = arith.constant dense<0.000000e+00> : vector<72x256xf32>
    %35 = tpu.matmul %32, %34, %cst_26 {dimension_numbers = #tpu.dot_dimension_numbers<[1], [0], [0], [1], [0, 0, 1, 1], [], []>} : vector<72x256xbf16>, vector<256x256xbf16>, vector<72x256xf32> -> vector<72x256xf32>
    %36 = arith.addf %30, %35 : vector<72x256xf32>
    %c12 = arith.constant 12 : index
    %c0_27 = arith.constant 0 : index
    %37 = vector.load %arg1[%c12, %c0_27] : memref<86x256xf32, #tpu.memory_space<vmem>>, vector<72x256xf32>
    %38 = arith.truncf %37 : vector<72x256xf32> to vector<72x256xbf16>
    %c6_28 = arith.constant 6 : index
    %c0_29 = arith.constant 0 : index
    %c0_30 = arith.constant 0 : index
    %39 = vector.load %arg2[%c6_28, %c0_29, %c0_30] : memref<9x256x256xbf16, #tpu.memory_space<vmem>>, vector<1x256x256xbf16>
    %40 = vector.shape_cast %39 : vector<1x256x256xbf16> to vector<256x256xbf16>
    %cst_31 = arith.constant dense<0.000000e+00> : vector<72x256xf32>
    %41 = tpu.matmul %38, %40, %cst_31 {dimension_numbers = #tpu.dot_dimension_numbers<[1], [0], [0], [1], [0, 0, 1, 1], [], []>} : vector<72x256xbf16>, vector<256x256xbf16>, vector<72x256xf32> -> vector<72x256xf32>
    %42 = arith.addf %36, %41 : vector<72x256xf32>
    %c13 = arith.constant 13 : index
    %c0_32 = arith.constant 0 : index
    %43 = vector.load %arg1[%c13, %c0_32] : memref<86x256xf32, #tpu.memory_space<vmem>>, vector<72x256xf32>
    %44 = arith.truncf %43 : vector<72x256xf32> to vector<72x256xbf16>
    %c7_33 = arith.constant 7 : index
    %c0_34 = arith.constant 0 : index
    %c0_35 = arith.constant 0 : index
    %45 = vector.load %arg2[%c7_33, %c0_34, %c0_35] : memref<9x256x256xbf16, #tpu.memory_space<vmem>>, vector<1x256x256xbf16>
    %46 = vector.shape_cast %45 : vector<1x256x256xbf16> to vector<256x256xbf16>
    %cst_36 = arith.constant dense<0.000000e+00> : vector<72x256xf32>
    %47 = tpu.matmul %44, %46, %cst_36 {dimension_numbers = #tpu.dot_dimension_numbers<[1], [0], [0], [1], [0, 0, 1, 1], [], []>} : vector<72x256xbf16>, vector<256x256xbf16>, vector<72x256xf32> -> vector<72x256xf32>
    %48 = arith.addf %42, %47 : vector<72x256xf32>
    %c14 = arith.constant 14 : index
    %c0_37 = arith.constant 0 : index
    %49 = vector.load %arg1[%c14, %c0_37] : memref<86x256xf32, #tpu.memory_space<vmem>>, vector<72x256xf32>
    %50 = arith.truncf %49 : vector<72x256xf32> to vector<72x256xbf16>
    %c8_38 = arith.constant 8 : index
    %c0_39 = arith.constant 0 : index
    %c0_40 = arith.constant 0 : index
    %51 = vector.load %arg2[%c8_38, %c0_39, %c0_40] : memref<9x256x256xbf16, #tpu.memory_space<vmem>>, vector<1x256x256xbf16>
    %52 = vector.shape_cast %51 : vector<1x256x256xbf16> to vector<256x256xbf16>
    %cst_41 = arith.constant dense<0.000000e+00> : vector<72x256xf32>
    %53 = tpu.matmul %50, %52, %cst_41 {dimension_numbers = #tpu.dot_dimension_numbers<[1], [0], [0], [1], [0, 0, 1, 1], [], []>} : vector<72x256xbf16>, vector<256x256xbf16>, vector<72x256xf32> -> vector<72x256xf32>
    %54 = arith.addf %48, %53 : vector<72x256xf32>
    %c0_42 = arith.constant 0 : index
    %c0_43 = arith.constant 0 : index
    %55 = vector.load %arg3[%c0_42, %c0_43] : memref<1x256xf32, #tpu.memory_space<vmem>>, vector<1x256xf32>
    %56 = vector.broadcast %55 : vector<1x256xf32> to vector<72x256xf32>
    %57 = arith.addf %54, %56 : vector<72x256xf32>
    %cst_44 = arith.constant 0.000000e+00 : f32
    %58 = vector.broadcast %cst_44 : f32 to vector<72x256xf32>
    %59 = arith.maximumf %57, %58 : vector<72x256xf32>
    %c0_45 = arith.constant 0 : index
    %c0_46 = arith.constant 0 : index
    %60 = vector.load %arg4[%c0_45, %c0_46] : memref<72x1xf32, #tpu.memory_space<vmem>>, vector<72x1xf32>
    %61 = vector.broadcast %60 : vector<72x1xf32> to vector<72x256xf32>
    %62 = arith.mulf %59, %61 : vector<72x256xf32>
    %63 = arith.truncf %62 : vector<72x256xf32> to vector<72x256xbf16>
    %c0_47 = arith.constant 0 : index
    %c0_48 = arith.constant 0 : index
    %64 = vector.load %arg5[%c0_47, %c0_48] : memref<72x256xbf16, #tpu.memory_space<vmem>>, vector<72x256xbf16>
    tpu.vector_store %arg5[%c0_47, %c0_48], %63 {strides = array<i32>} : memref<72x256xbf16, #tpu.memory_space<vmem>>, vector<72x256xbf16>,
    return
  }
  func.func @transform_0(%arg0: i32) -> (i32, i32) {
    %c0_i32 = arith.constant 0 : i32
    %c0_i32_0 = arith.constant 0 : i32
    %c0_i32_1 = arith.constant 0 : i32
    return %c0_i32, %c0_i32_0 : i32, i32
  }
  func.func @transform_1(%arg0: i32) -> (i32, i32, i32) {
    %c0_i32 = arith.constant 0 : i32
    %c0_i32_0 = arith.constant 0 : i32
    %c0_i32_1 = arith.constant 0 : i32
    return %c0_i32, %c0_i32_0, %arg0 : i32, i32, i32
  }
  func.func @transform_2(%arg0: i32) -> (i32, i32) {
    %c0_i32 = arith.constant 0 : i32
    %c0_i32_0 = arith.constant 0 : i32
    return %c0_i32, %arg0 : i32, i32
  }
  func.func @transform_3(%arg0: i32) -> (i32, i32) {
    %c0_i32 = arith.constant 0 : i32
    %c0_i32_0 = arith.constant 0 : i32
    %c0_i32_1 = arith.constant 0 : i32
    return %c0_i32, %c0_i32_0 : i32, i32
  }
  func.func @transform_4(%arg0: i32) -> (i32, i32) {
    %c0_i32 = arith.constant 0 : i32
    %c0_i32_0 = arith.constant 0 : i32
    return %c0_i32, %arg0 : i32, i32
  }
}

module attributes {stable_mosaic.version = 11 : i64} {
  func.func @_matmul_fused_kernel(%arg0: i32, %arg1: i32, %arg2: memref<8x2304xbf16, #tpu.memory_space<vmem>>, %arg3: memref<2304x256xbf16, #tpu.memory_space<vmem>>, %arg4: memref<1x256xf32, #tpu.memory_space<vmem>>, %arg5: memref<8x256xbf16, #tpu.memory_space<vmem>>) attributes {dimension_semantics = [#tpu.dimension_semantics<parallel>, #tpu.dimension_semantics<parallel>], iteration_bounds = array<i64: 1, 2>, scalar_prefetch = 0 : i64, scratch_operands = 0 : i64, tpu.core_type = #tpu.core_type<tc>, window_params = [{transform_indices = @transform_0, window_bounds = array<i64: 8, 2304>}, {transform_indices = @transform_1, window_bounds = array<i64: 2304, 256>}, {transform_indices = @transform_2, window_bounds = array<i64: 1, 256>}, {transform_indices = @transform_3, window_bounds = array<i64: 8, 256>}]} {
    %c0 = arith.constant 0 : index
    %c0_0 = arith.constant 0 : index
    %0 = vector.load %arg2[%c0, %c0_0] : memref<8x2304xbf16, #tpu.memory_space<vmem>>, vector<8x2304xbf16>
    %c0_1 = arith.constant 0 : index
    %c0_2 = arith.constant 0 : index
    %1 = vector.load %arg3[%c0_1, %c0_2] : memref<2304x256xbf16, #tpu.memory_space<vmem>>, vector<2304x256xbf16>
    %cst = arith.constant dense<0.000000e+00> : vector<8x256xf32>
    %2 = tpu.matmul %0, %1, %cst {dimension_numbers = #tpu.dot_dimension_numbers<[1], [0], [0], [1], [0, 0, 1, 1], [], []>} : vector<8x2304xbf16>, vector<2304x256xbf16>, vector<8x256xf32> -> vector<8x256xf32>
    %c0_3 = arith.constant 0 : index
    %c0_4 = arith.constant 0 : index
    %3 = vector.load %arg4[%c0_3, %c0_4] : memref<1x256xf32, #tpu.memory_space<vmem>>, vector<1x256xf32>
    %4 = vector.broadcast %3 : vector<1x256xf32> to vector<8x256xf32>
    %5 = arith.addf %2, %4 : vector<8x256xf32>
    %cst_5 = arith.constant 0.000000e+00 : f32
    %6 = vector.broadcast %cst_5 : f32 to vector<8x256xf32>
    %7 = arith.maximumf %5, %6 : vector<8x256xf32>
    %8 = arith.truncf %7 : vector<8x256xf32> to vector<8x256xbf16>
    %c0_6 = arith.constant 0 : index
    %c0_7 = arith.constant 0 : index
    %9 = vector.load %arg5[%c0_6, %c0_7] : memref<8x256xbf16, #tpu.memory_space<vmem>>, vector<8x256xbf16>
    tpu.vector_store %arg5[%c0_6, %c0_7], %8 {strides = array<i32>} : memref<8x256xbf16, #tpu.memory_space<vmem>>, vector<8x256xbf16>,
    return
  }
  func.func @transform_0(%arg0: i32, %arg1: i32) -> (i32, i32) {
    %c0_i32 = arith.constant 0 : i32
    %c0_i32_0 = arith.constant 0 : i32
    return %arg0, %c0_i32 : i32, i32
  }
  func.func @transform_1(%arg0: i32, %arg1: i32) -> (i32, i32) {
    %c0_i32 = arith.constant 0 : i32
    %c0_i32_0 = arith.constant 0 : i32
    return %c0_i32, %arg1 : i32, i32
  }
  func.func @transform_2(%arg0: i32, %arg1: i32) -> (i32, i32) {
    %c0_i32 = arith.constant 0 : i32
    %c0_i32_0 = arith.constant 0 : i32
    return %c0_i32, %arg1 : i32, i32
  }
  func.func @transform_3(%arg0: i32, %arg1: i32) -> (i32, i32) {
    %c0_i32 = arith.constant 0 : i32
    return %arg0, %arg1 : i32, i32
  }
}

module attributes {stable_mosaic.version = 11 : i64} {
  func.func @_matmul_fused_kernel(%arg0: i32, %arg1: i32, %arg2: memref<8x256xbf16, #tpu.memory_space<vmem>>, %arg3: memref<256x256xbf16, #tpu.memory_space<vmem>>, %arg4: memref<1x256xf32, #tpu.memory_space<vmem>>, %arg5: memref<8x256xbf16, #tpu.memory_space<vmem>>) attributes {dimension_semantics = [#tpu.dimension_semantics<parallel>, #tpu.dimension_semantics<parallel>], iteration_bounds = array<i64: 1, 2>, scalar_prefetch = 0 : i64, scratch_operands = 0 : i64, tpu.core_type = #tpu.core_type<tc>, window_params = [{transform_indices = @transform_0, window_bounds = array<i64: 8, 256>}, {transform_indices = @transform_1, window_bounds = array<i64: 256, 256>}, {transform_indices = @transform_2, window_bounds = array<i64: 1, 256>}, {transform_indices = @transform_3, window_bounds = array<i64: 8, 256>}]} {
    %c0 = arith.constant 0 : index
    %c0_0 = arith.constant 0 : index
    %0 = vector.load %arg2[%c0, %c0_0] : memref<8x256xbf16, #tpu.memory_space<vmem>>, vector<8x256xbf16>
    %c0_1 = arith.constant 0 : index
    %c0_2 = arith.constant 0 : index
    %1 = vector.load %arg3[%c0_1, %c0_2] : memref<256x256xbf16, #tpu.memory_space<vmem>>, vector<256x256xbf16>
    %cst = arith.constant dense<0.000000e+00> : vector<8x256xf32>
    %2 = tpu.matmul %0, %1, %cst {dimension_numbers = #tpu.dot_dimension_numbers<[1], [0], [0], [1], [0, 0, 1, 1], [], []>} : vector<8x256xbf16>, vector<256x256xbf16>, vector<8x256xf32> -> vector<8x256xf32>
    %c0_3 = arith.constant 0 : index
    %c0_4 = arith.constant 0 : index
    %3 = vector.load %arg4[%c0_3, %c0_4] : memref<1x256xf32, #tpu.memory_space<vmem>>, vector<1x256xf32>
    %4 = vector.broadcast %3 : vector<1x256xf32> to vector<8x256xf32>
    %5 = arith.addf %2, %4 : vector<8x256xf32>
    %6 = arith.truncf %5 : vector<8x256xf32> to vector<8x256xbf16>
    %c0_5 = arith.constant 0 : index
    %c0_6 = arith.constant 0 : index
    %7 = vector.load %arg5[%c0_5, %c0_6] : memref<8x256xbf16, #tpu.memory_space<vmem>>, vector<8x256xbf16>
    tpu.vector_store %arg5[%c0_5, %c0_6], %6 {strides = array<i32>} : memref<8x256xbf16, #tpu.memory_space<vmem>>, vector<8x256xbf16>,
    return
  }
  func.func @transform_0(%arg0: i32, %arg1: i32) -> (i32, i32) {
    %c0_i32 = arith.constant 0 : i32
    %c0_i32_0 = arith.constant 0 : i32
    return %arg0, %c0_i32 : i32, i32
  }
  func.func @transform_1(%arg0: i32, %arg1: i32) -> (i32, i32) {
    %c0_i32 = arith.constant 0 : i32
    %c0_i32_0 = arith.constant 0 : i32
    return %c0_i32, %arg1 : i32, i32
  }
  func.func @transform_2(%arg0: i32, %arg1: i32) -> (i32, i32) {
    %c0_i32 = arith.constant 0 : i32
    %c0_i32_0 = arith.constant 0 : i32
    return %c0_i32, %arg1 : i32, i32
  }
  func.func @transform_3(%arg0: i32, %arg1: i32) -> (i32, i32) {
    %c0_i32 = arith.constant 0 : i32
    return %arg0, %arg1 : i32, i32
  }
}

module attributes {stable_mosaic.version = 11 : i64} {
  func.func @_conv3x3_tap_kernel(%arg0: i32, %arg1: memref<42x512xf32, #tpu.memory_space<vmem>>, %arg2: memref<9x512x256xbf16, #tpu.memory_space<vmem>>, %arg3: memref<1x256xf32, #tpu.memory_space<vmem>>, %arg4: memref<32x1xf32, #tpu.memory_space<vmem>>, %arg5: memref<32x256xbf16, #tpu.memory_space<vmem>>, %arg6: memref<32x256xbf16, #tpu.memory_space<vmem>>) attributes {dimension_semantics = [#tpu.dimension_semantics<parallel>], iteration_bounds = array<i64: 2>, scalar_prefetch = 0 : i64, scratch_operands = 0 : i64, tpu.core_type = #tpu.core_type<tc>, window_params = [{pipeline_mode = #tpu.pipeline_mode<synchronous>, transform_indices = @transform_0, window_bounds = array<i64: 42, 512>}, {transform_indices = @transform_1, window_bounds = array<i64: 9, 512, 256>}, {transform_indices = @transform_2, window_bounds = array<i64: 1, 256>}, {pipeline_mode = #tpu.pipeline_mode<synchronous>, transform_indices = @transform_3, window_bounds = array<i64: 32, 1>}, {transform_indices = @transform_4, window_bounds = array<i64: 32, 256>}, {transform_indices = @transform_5, window_bounds = array<i64: 32, 256>}]} {
    %cst = arith.constant 0.000000e+00 : f32
    %0 = vector.broadcast %cst : f32 to vector<32x256xf32>
    %c0 = arith.constant 0 : index
    %c0_0 = arith.constant 0 : index
    %1 = vector.load %arg1[%c0, %c0_0] : memref<42x512xf32, #tpu.memory_space<vmem>>, vector<32x512xf32>
    %2 = arith.truncf %1 : vector<32x512xf32> to vector<32x512xbf16>
    %c0_1 = arith.constant 0 : index
    %c0_2 = arith.constant 0 : index
    %c0_3 = arith.constant 0 : index
    %3 = vector.load %arg2[%c0_1, %c0_2, %c0_3] : memref<9x512x256xbf16, #tpu.memory_space<vmem>>, vector<1x512x256xbf16>
    %4 = vector.shape_cast %3 : vector<1x512x256xbf16> to vector<512x256xbf16>
    %cst_4 = arith.constant dense<0.000000e+00> : vector<32x256xf32>
    %5 = tpu.matmul %2, %4, %cst_4 {dimension_numbers = #tpu.dot_dimension_numbers<[1], [0], [0], [1], [0, 0, 1, 1], [], []>} : vector<32x512xbf16>, vector<512x256xbf16>, vector<32x256xf32> -> vector<32x256xf32>
    %6 = arith.addf %0, %5 : vector<32x256xf32>
    %c1 = arith.constant 1 : index
    %c0_5 = arith.constant 0 : index
    %7 = vector.load %arg1[%c1, %c0_5] : memref<42x512xf32, #tpu.memory_space<vmem>>, vector<32x512xf32>
    %8 = arith.truncf %7 : vector<32x512xf32> to vector<32x512xbf16>
    %c1_6 = arith.constant 1 : index
    %c0_7 = arith.constant 0 : index
    %c0_8 = arith.constant 0 : index
    %9 = vector.load %arg2[%c1_6, %c0_7, %c0_8] : memref<9x512x256xbf16, #tpu.memory_space<vmem>>, vector<1x512x256xbf16>
    %10 = vector.shape_cast %9 : vector<1x512x256xbf16> to vector<512x256xbf16>
    %cst_9 = arith.constant dense<0.000000e+00> : vector<32x256xf32>
    %11 = tpu.matmul %8, %10, %cst_9 {dimension_numbers = #tpu.dot_dimension_numbers<[1], [0], [0], [1], [0, 0, 1, 1], [], []>} : vector<32x512xbf16>, vector<512x256xbf16>, vector<32x256xf32> -> vector<32x256xf32>
    %12 = arith.addf %6, %11 : vector<32x256xf32>
    %c2 = arith.constant 2 : index
    %c0_10 = arith.constant 0 : index
    %13 = vector.load %arg1[%c2, %c0_10] : memref<42x512xf32, #tpu.memory_space<vmem>>, vector<32x512xf32>
    %14 = arith.truncf %13 : vector<32x512xf32> to vector<32x512xbf16>
    %c2_11 = arith.constant 2 : index
    %c0_12 = arith.constant 0 : index
    %c0_13 = arith.constant 0 : index
    %15 = vector.load %arg2[%c2_11, %c0_12, %c0_13] : memref<9x512x256xbf16, #tpu.memory_space<vmem>>, vector<1x512x256xbf16>
    %16 = vector.shape_cast %15 : vector<1x512x256xbf16> to vector<512x256xbf16>
    %cst_14 = arith.constant dense<0.000000e+00> : vector<32x256xf32>
    %17 = tpu.matmul %14, %16, %cst_14 {dimension_numbers = #tpu.dot_dimension_numbers<[1], [0], [0], [1], [0, 0, 1, 1], [], []>} : vector<32x512xbf16>, vector<512x256xbf16>, vector<32x256xf32> -> vector<32x256xf32>
    %18 = arith.addf %12, %17 : vector<32x256xf32>
    %c4 = arith.constant 4 : index
    %c0_15 = arith.constant 0 : index
    %19 = vector.load %arg1[%c4, %c0_15] : memref<42x512xf32, #tpu.memory_space<vmem>>, vector<32x512xf32>
    %20 = arith.truncf %19 : vector<32x512xf32> to vector<32x512xbf16>
    %c3 = arith.constant 3 : index
    %c0_16 = arith.constant 0 : index
    %c0_17 = arith.constant 0 : index
    %21 = vector.load %arg2[%c3, %c0_16, %c0_17] : memref<9x512x256xbf16, #tpu.memory_space<vmem>>, vector<1x512x256xbf16>
    %22 = vector.shape_cast %21 : vector<1x512x256xbf16> to vector<512x256xbf16>
    %cst_18 = arith.constant dense<0.000000e+00> : vector<32x256xf32>
    %23 = tpu.matmul %20, %22, %cst_18 {dimension_numbers = #tpu.dot_dimension_numbers<[1], [0], [0], [1], [0, 0, 1, 1], [], []>} : vector<32x512xbf16>, vector<512x256xbf16>, vector<32x256xf32> -> vector<32x256xf32>
    %24 = arith.addf %18, %23 : vector<32x256xf32>
    %c5 = arith.constant 5 : index
    %c0_19 = arith.constant 0 : index
    %25 = vector.load %arg1[%c5, %c0_19] : memref<42x512xf32, #tpu.memory_space<vmem>>, vector<32x512xf32>
    %26 = arith.truncf %25 : vector<32x512xf32> to vector<32x512xbf16>
    %c4_20 = arith.constant 4 : index
    %c0_21 = arith.constant 0 : index
    %c0_22 = arith.constant 0 : index
    %27 = vector.load %arg2[%c4_20, %c0_21, %c0_22] : memref<9x512x256xbf16, #tpu.memory_space<vmem>>, vector<1x512x256xbf16>
    %28 = vector.shape_cast %27 : vector<1x512x256xbf16> to vector<512x256xbf16>
    %cst_23 = arith.constant dense<0.000000e+00> : vector<32x256xf32>
    %29 = tpu.matmul %26, %28, %cst_23 {dimension_numbers = #tpu.dot_dimension_numbers<[1], [0], [0], [1], [0, 0, 1, 1], [], []>} : vector<32x512xbf16>, vector<512x256xbf16>, vector<32x256xf32> -> vector<32x256xf32>
    %30 = arith.addf %24, %29 : vector<32x256xf32>
    %c6 = arith.constant 6 : index
    %c0_24 = arith.constant 0 : index
    %31 = vector.load %arg1[%c6, %c0_24] : memref<42x512xf32, #tpu.memory_space<vmem>>, vector<32x512xf32>
    %32 = arith.truncf %31 : vector<32x512xf32> to vector<32x512xbf16>
    %c5_25 = arith.constant 5 : index
    %c0_26 = arith.constant 0 : index
    %c0_27 = arith.constant 0 : index
    %33 = vector.load %arg2[%c5_25, %c0_26, %c0_27] : memref<9x512x256xbf16, #tpu.memory_space<vmem>>, vector<1x512x256xbf16>
    %34 = vector.shape_cast %33 : vector<1x512x256xbf16> to vector<512x256xbf16>
    %cst_28 = arith.constant dense<0.000000e+00> : vector<32x256xf32>
    %35 = tpu.matmul %32, %34, %cst_28 {dimension_numbers = #tpu.dot_dimension_numbers<[1], [0], [0], [1], [0, 0, 1, 1], [], []>} : vector<32x512xbf16>, vector<512x256xbf16>, vector<32x256xf32> -> vector<32x256xf32>
    %36 = arith.addf %30, %35 : vector<32x256xf32>
    %c8 = arith.constant 8 : index
    %c0_29 = arith.constant 0 : index
    %37 = vector.load %arg1[%c8, %c0_29] : memref<42x512xf32, #tpu.memory_space<vmem>>, vector<32x512xf32>
    %38 = arith.truncf %37 : vector<32x512xf32> to vector<32x512xbf16>
    %c6_30 = arith.constant 6 : index
    %c0_31 = arith.constant 0 : index
    %c0_32 = arith.constant 0 : index
    %39 = vector.load %arg2[%c6_30, %c0_31, %c0_32] : memref<9x512x256xbf16, #tpu.memory_space<vmem>>, vector<1x512x256xbf16>
    %40 = vector.shape_cast %39 : vector<1x512x256xbf16> to vector<512x256xbf16>
    %cst_33 = arith.constant dense<0.000000e+00> : vector<32x256xf32>
    %41 = tpu.matmul %38, %40, %cst_33 {dimension_numbers = #tpu.dot_dimension_numbers<[1], [0], [0], [1], [0, 0, 1, 1], [], []>} : vector<32x512xbf16>, vector<512x256xbf16>, vector<32x256xf32> -> vector<32x256xf32>
    %42 = arith.addf %36, %41 : vector<32x256xf32>
    %c9 = arith.constant 9 : index
    %c0_34 = arith.constant 0 : index
    %43 = vector.load %arg1[%c9, %c0_34] : memref<42x512xf32, #tpu.memory_space<vmem>>, vector<32x512xf32>
    %44 = arith.truncf %43 : vector<32x512xf32> to vector<32x512xbf16>
    %c7 = arith.constant 7 : index
    %c0_35 = arith.constant 0 : index
    %c0_36 = arith.constant 0 : index
    %45 = vector.load %arg2[%c7, %c0_35, %c0_36] : memref<9x512x256xbf16, #tpu.memory_space<vmem>>, vector<1x512x256xbf16>
    %46 = vector.shape_cast %45 : vector<1x512x256xbf16> to vector<512x256xbf16>
    %cst_37 = arith.constant dense<0.000000e+00> : vector<32x256xf32>
    %47 = tpu.matmul %44, %46, %cst_37 {dimension_numbers = #tpu.dot_dimension_numbers<[1], [0], [0], [1], [0, 0, 1, 1], [], []>} : vector<32x512xbf16>, vector<512x256xbf16>, vector<32x256xf32> -> vector<32x256xf32>
    %48 = arith.addf %42, %47 : vector<32x256xf32>
    %c10 = arith.constant 10 : index
    %c0_38 = arith.constant 0 : index
    %49 = vector.load %arg1[%c10, %c0_38] : memref<42x512xf32, #tpu.memory_space<vmem>>, vector<32x512xf32>
    %50 = arith.truncf %49 : vector<32x512xf32> to vector<32x512xbf16>
    %c8_39 = arith.constant 8 : index
    %c0_40 = arith.constant 0 : index
    %c0_41 = arith.constant 0 : index
    %51 = vector.load %arg2[%c8_39, %c0_40, %c0_41] : memref<9x512x256xbf16, #tpu.memory_space<vmem>>, vector<1x512x256xbf16>
    %52 = vector.shape_cast %51 : vector<1x512x256xbf16> to vector<512x256xbf16>
    %cst_42 = arith.constant dense<0.000000e+00> : vector<32x256xf32>
    %53 = tpu.matmul %50, %52, %cst_42 {dimension_numbers = #tpu.dot_dimension_numbers<[1], [0], [0], [1], [0, 0, 1, 1], [], []>} : vector<32x512xbf16>, vector<512x256xbf16>, vector<32x256xf32> -> vector<32x256xf32>
    %54 = arith.addf %48, %53 : vector<32x256xf32>
    %c0_43 = arith.constant 0 : index
    %c0_44 = arith.constant 0 : index
    %55 = vector.load %arg3[%c0_43, %c0_44] : memref<1x256xf32, #tpu.memory_space<vmem>>, vector<1x256xf32>
    %56 = vector.broadcast %55 : vector<1x256xf32> to vector<32x256xf32>
    %57 = arith.addf %54, %56 : vector<32x256xf32>
    %c0_45 = arith.constant 0 : index
    %c0_46 = arith.constant 0 : index
    %58 = vector.load %arg5[%c0_45, %c0_46] : memref<32x256xbf16, #tpu.memory_space<vmem>>, vector<32x256xbf16>
    %59 = arith.extf %58 : vector<32x256xbf16> to vector<32x256xf32>
    %60 = arith.addf %57, %59 : vector<32x256xf32>
    %cst_47 = arith.constant 0.000000e+00 : f32
    %61 = vector.broadcast %cst_47 : f32 to vector<32x256xf32>
    %62 = arith.maximumf %60, %61 : vector<32x256xf32>
    %c0_48 = arith.constant 0 : index
    %c0_49 = arith.constant 0 : index
    %63 = vector.load %arg4[%c0_48, %c0_49] : memref<32x1xf32, #tpu.memory_space<vmem>>, vector<32x1xf32>
    %64 = vector.broadcast %63 : vector<32x1xf32> to vector<32x256xf32>
    %65 = arith.mulf %62, %64 : vector<32x256xf32>
    %66 = arith.truncf %65 : vector<32x256xf32> to vector<32x256xbf16>
    %c0_50 = arith.constant 0 : index
    %c0_51 = arith.constant 0 : index
    %67 = vector.load %arg6[%c0_50, %c0_51] : memref<32x256xbf16, #tpu.memory_space<vmem>>, vector<32x256xbf16>
    tpu.vector_store %arg6[%c0_50, %c0_51], %66 {strides = array<i32>} : memref<32x256xbf16, #tpu.memory_space<vmem>>, vector<32x256xbf16>,
    return
  }
  func.func @transform_0(%arg0: i32) -> (i32, i32) {
    %c0_i32 = arith.constant 0 : i32
    %c0_i32_0 = arith.constant 0 : i32
    %c0_i32_1 = arith.constant 0 : i32
    return %c0_i32, %c0_i32_0 : i32, i32
  }
  func.func @transform_1(%arg0: i32) -> (i32, i32, i32) {
    %c0_i32 = arith.constant 0 : i32
    %c0_i32_0 = arith.constant 0 : i32
    %c0_i32_1 = arith.constant 0 : i32
    return %c0_i32, %c0_i32_0, %arg0 : i32, i32, i32
  }
  func.func @transform_2(%arg0: i32) -> (i32, i32) {
    %c0_i32 = arith.constant 0 : i32
    %c0_i32_0 = arith.constant 0 : i32
    return %c0_i32, %arg0 : i32, i32
  }
  func.func @transform_3(%arg0: i32) -> (i32, i32) {
    %c0_i32 = arith.constant 0 : i32
    %c0_i32_0 = arith.constant 0 : i32
    %c0_i32_1 = arith.constant 0 : i32
    return %c0_i32, %c0_i32_0 : i32, i32
  }
  func.func @transform_4(%arg0: i32) -> (i32, i32) {
    %c0_i32 = arith.constant 0 : i32
    %c0_i32_0 = arith.constant 0 : i32
    return %c0_i32, %arg0 : i32, i32
  }
  func.func @transform_5(%arg0: i32) -> (i32, i32) {
    %c0_i32 = arith.constant 0 : i32
    %c0_i32_0 = arith.constant 0 : i32
    return %c0_i32, %arg0 : i32, i32
  }
}

module attributes {stable_mosaic.version = 11 : i64} {
  func.func @_conv3x3_tap_kernel(%arg0: i32, %arg1: memref<42x512xf32, #tpu.memory_space<vmem>>, %arg2: memref<9x512x256xbf16, #tpu.memory_space<vmem>>, %arg3: memref<1x256xf32, #tpu.memory_space<vmem>>, %arg4: memref<32x1xf32, #tpu.memory_space<vmem>>, %arg5: memref<32x256xbf16, #tpu.memory_space<vmem>>) attributes {dimension_semantics = [#tpu.dimension_semantics<parallel>], iteration_bounds = array<i64: 2>, scalar_prefetch = 0 : i64, scratch_operands = 0 : i64, tpu.core_type = #tpu.core_type<tc>, window_params = [{pipeline_mode = #tpu.pipeline_mode<synchronous>, transform_indices = @transform_0, window_bounds = array<i64: 42, 512>}, {transform_indices = @transform_1, window_bounds = array<i64: 9, 512, 256>}, {transform_indices = @transform_2, window_bounds = array<i64: 1, 256>}, {pipeline_mode = #tpu.pipeline_mode<synchronous>, transform_indices = @transform_3, window_bounds = array<i64: 32, 1>}, {transform_indices = @transform_4, window_bounds = array<i64: 32, 256>}]} {
    %cst = arith.constant 0.000000e+00 : f32
    %0 = vector.broadcast %cst : f32 to vector<32x256xf32>
    %c0 = arith.constant 0 : index
    %c0_0 = arith.constant 0 : index
    %1 = vector.load %arg1[%c0, %c0_0] : memref<42x512xf32, #tpu.memory_space<vmem>>, vector<32x512xf32>
    %2 = arith.truncf %1 : vector<32x512xf32> to vector<32x512xbf16>
    %c0_1 = arith.constant 0 : index
    %c0_2 = arith.constant 0 : index
    %c0_3 = arith.constant 0 : index
    %3 = vector.load %arg2[%c0_1, %c0_2, %c0_3] : memref<9x512x256xbf16, #tpu.memory_space<vmem>>, vector<1x512x256xbf16>
    %4 = vector.shape_cast %3 : vector<1x512x256xbf16> to vector<512x256xbf16>
    %cst_4 = arith.constant dense<0.000000e+00> : vector<32x256xf32>
    %5 = tpu.matmul %2, %4, %cst_4 {dimension_numbers = #tpu.dot_dimension_numbers<[1], [0], [0], [1], [0, 0, 1, 1], [], []>} : vector<32x512xbf16>, vector<512x256xbf16>, vector<32x256xf32> -> vector<32x256xf32>
    %6 = arith.addf %0, %5 : vector<32x256xf32>
    %c1 = arith.constant 1 : index
    %c0_5 = arith.constant 0 : index
    %7 = vector.load %arg1[%c1, %c0_5] : memref<42x512xf32, #tpu.memory_space<vmem>>, vector<32x512xf32>
    %8 = arith.truncf %7 : vector<32x512xf32> to vector<32x512xbf16>
    %c1_6 = arith.constant 1 : index
    %c0_7 = arith.constant 0 : index
    %c0_8 = arith.constant 0 : index
    %9 = vector.load %arg2[%c1_6, %c0_7, %c0_8] : memref<9x512x256xbf16, #tpu.memory_space<vmem>>, vector<1x512x256xbf16>
    %10 = vector.shape_cast %9 : vector<1x512x256xbf16> to vector<512x256xbf16>
    %cst_9 = arith.constant dense<0.000000e+00> : vector<32x256xf32>
    %11 = tpu.matmul %8, %10, %cst_9 {dimension_numbers = #tpu.dot_dimension_numbers<[1], [0], [0], [1], [0, 0, 1, 1], [], []>} : vector<32x512xbf16>, vector<512x256xbf16>, vector<32x256xf32> -> vector<32x256xf32>
    %12 = arith.addf %6, %11 : vector<32x256xf32>
    %c2 = arith.constant 2 : index
    %c0_10 = arith.constant 0 : index
    %13 = vector.load %arg1[%c2, %c0_10] : memref<42x512xf32, #tpu.memory_space<vmem>>, vector<32x512xf32>
    %14 = arith.truncf %13 : vector<32x512xf32> to vector<32x512xbf16>
    %c2_11 = arith.constant 2 : index
    %c0_12 = arith.constant 0 : index
    %c0_13 = arith.constant 0 : index
    %15 = vector.load %arg2[%c2_11, %c0_12, %c0_13] : memref<9x512x256xbf16, #tpu.memory_space<vmem>>, vector<1x512x256xbf16>
    %16 = vector.shape_cast %15 : vector<1x512x256xbf16> to vector<512x256xbf16>
    %cst_14 = arith.constant dense<0.000000e+00> : vector<32x256xf32>
    %17 = tpu.matmul %14, %16, %cst_14 {dimension_numbers = #tpu.dot_dimension_numbers<[1], [0], [0], [1], [0, 0, 1, 1], [], []>} : vector<32x512xbf16>, vector<512x256xbf16>, vector<32x256xf32> -> vector<32x256xf32>
    %18 = arith.addf %12, %17 : vector<32x256xf32>
    %c4 = arith.constant 4 : index
    %c0_15 = arith.constant 0 : index
    %19 = vector.load %arg1[%c4, %c0_15] : memref<42x512xf32, #tpu.memory_space<vmem>>, vector<32x512xf32>
    %20 = arith.truncf %19 : vector<32x512xf32> to vector<32x512xbf16>
    %c3 = arith.constant 3 : index
    %c0_16 = arith.constant 0 : index
    %c0_17 = arith.constant 0 : index
    %21 = vector.load %arg2[%c3, %c0_16, %c0_17] : memref<9x512x256xbf16, #tpu.memory_space<vmem>>, vector<1x512x256xbf16>
    %22 = vector.shape_cast %21 : vector<1x512x256xbf16> to vector<512x256xbf16>
    %cst_18 = arith.constant dense<0.000000e+00> : vector<32x256xf32>
    %23 = tpu.matmul %20, %22, %cst_18 {dimension_numbers = #tpu.dot_dimension_numbers<[1], [0], [0], [1], [0, 0, 1, 1], [], []>} : vector<32x512xbf16>, vector<512x256xbf16>, vector<32x256xf32> -> vector<32x256xf32>
    %24 = arith.addf %18, %23 : vector<32x256xf32>
    %c5 = arith.constant 5 : index
    %c0_19 = arith.constant 0 : index
    %25 = vector.load %arg1[%c5, %c0_19] : memref<42x512xf32, #tpu.memory_space<vmem>>, vector<32x512xf32>
    %26 = arith.truncf %25 : vector<32x512xf32> to vector<32x512xbf16>
    %c4_20 = arith.constant 4 : index
    %c0_21 = arith.constant 0 : index
    %c0_22 = arith.constant 0 : index
    %27 = vector.load %arg2[%c4_20, %c0_21, %c0_22] : memref<9x512x256xbf16, #tpu.memory_space<vmem>>, vector<1x512x256xbf16>
    %28 = vector.shape_cast %27 : vector<1x512x256xbf16> to vector<512x256xbf16>
    %cst_23 = arith.constant dense<0.000000e+00> : vector<32x256xf32>
    %29 = tpu.matmul %26, %28, %cst_23 {dimension_numbers = #tpu.dot_dimension_numbers<[1], [0], [0], [1], [0, 0, 1, 1], [], []>} : vector<32x512xbf16>, vector<512x256xbf16>, vector<32x256xf32> -> vector<32x256xf32>
    %30 = arith.addf %24, %29 : vector<32x256xf32>
    %c6 = arith.constant 6 : index
    %c0_24 = arith.constant 0 : index
    %31 = vector.load %arg1[%c6, %c0_24] : memref<42x512xf32, #tpu.memory_space<vmem>>, vector<32x512xf32>
    %32 = arith.truncf %31 : vector<32x512xf32> to vector<32x512xbf16>
    %c5_25 = arith.constant 5 : index
    %c0_26 = arith.constant 0 : index
    %c0_27 = arith.constant 0 : index
    %33 = vector.load %arg2[%c5_25, %c0_26, %c0_27] : memref<9x512x256xbf16, #tpu.memory_space<vmem>>, vector<1x512x256xbf16>
    %34 = vector.shape_cast %33 : vector<1x512x256xbf16> to vector<512x256xbf16>
    %cst_28 = arith.constant dense<0.000000e+00> : vector<32x256xf32>
    %35 = tpu.matmul %32, %34, %cst_28 {dimension_numbers = #tpu.dot_dimension_numbers<[1], [0], [0], [1], [0, 0, 1, 1], [], []>} : vector<32x512xbf16>, vector<512x256xbf16>, vector<32x256xf32> -> vector<32x256xf32>
    %36 = arith.addf %30, %35 : vector<32x256xf32>
    %c8 = arith.constant 8 : index
    %c0_29 = arith.constant 0 : index
    %37 = vector.load %arg1[%c8, %c0_29] : memref<42x512xf32, #tpu.memory_space<vmem>>, vector<32x512xf32>
    %38 = arith.truncf %37 : vector<32x512xf32> to vector<32x512xbf16>
    %c6_30 = arith.constant 6 : index
    %c0_31 = arith.constant 0 : index
    %c0_32 = arith.constant 0 : index
    %39 = vector.load %arg2[%c6_30, %c0_31, %c0_32] : memref<9x512x256xbf16, #tpu.memory_space<vmem>>, vector<1x512x256xbf16>
    %40 = vector.shape_cast %39 : vector<1x512x256xbf16> to vector<512x256xbf16>
    %cst_33 = arith.constant dense<0.000000e+00> : vector<32x256xf32>
    %41 = tpu.matmul %38, %40, %cst_33 {dimension_numbers = #tpu.dot_dimension_numbers<[1], [0], [0], [1], [0, 0, 1, 1], [], []>} : vector<32x512xbf16>, vector<512x256xbf16>, vector<32x256xf32> -> vector<32x256xf32>
    %42 = arith.addf %36, %41 : vector<32x256xf32>
    %c9 = arith.constant 9 : index
    %c0_34 = arith.constant 0 : index
    %43 = vector.load %arg1[%c9, %c0_34] : memref<42x512xf32, #tpu.memory_space<vmem>>, vector<32x512xf32>
    %44 = arith.truncf %43 : vector<32x512xf32> to vector<32x512xbf16>
    %c7 = arith.constant 7 : index
    %c0_35 = arith.constant 0 : index
    %c0_36 = arith.constant 0 : index
    %45 = vector.load %arg2[%c7, %c0_35, %c0_36] : memref<9x512x256xbf16, #tpu.memory_space<vmem>>, vector<1x512x256xbf16>
    %46 = vector.shape_cast %45 : vector<1x512x256xbf16> to vector<512x256xbf16>
    %cst_37 = arith.constant dense<0.000000e+00> : vector<32x256xf32>
    %47 = tpu.matmul %44, %46, %cst_37 {dimension_numbers = #tpu.dot_dimension_numbers<[1], [0], [0], [1], [0, 0, 1, 1], [], []>} : vector<32x512xbf16>, vector<512x256xbf16>, vector<32x256xf32> -> vector<32x256xf32>
    %48 = arith.addf %42, %47 : vector<32x256xf32>
    %c10 = arith.constant 10 : index
    %c0_38 = arith.constant 0 : index
    %49 = vector.load %arg1[%c10, %c0_38] : memref<42x512xf32, #tpu.memory_space<vmem>>, vector<32x512xf32>
    %50 = arith.truncf %49 : vector<32x512xf32> to vector<32x512xbf16>
    %c8_39 = arith.constant 8 : index
    %c0_40 = arith.constant 0 : index
    %c0_41 = arith.constant 0 : index
    %51 = vector.load %arg2[%c8_39, %c0_40, %c0_41] : memref<9x512x256xbf16, #tpu.memory_space<vmem>>, vector<1x512x256xbf16>
    %52 = vector.shape_cast %51 : vector<1x512x256xbf16> to vector<512x256xbf16>
    %cst_42 = arith.constant dense<0.000000e+00> : vector<32x256xf32>
    %53 = tpu.matmul %50, %52, %cst_42 {dimension_numbers = #tpu.dot_dimension_numbers<[1], [0], [0], [1], [0, 0, 1, 1], [], []>} : vector<32x512xbf16>, vector<512x256xbf16>, vector<32x256xf32> -> vector<32x256xf32>
    %54 = arith.addf %48, %53 : vector<32x256xf32>
    %c0_43 = arith.constant 0 : index
    %c0_44 = arith.constant 0 : index
    %55 = vector.load %arg3[%c0_43, %c0_44] : memref<1x256xf32, #tpu.memory_space<vmem>>, vector<1x256xf32>
    %56 = vector.broadcast %55 : vector<1x256xf32> to vector<32x256xf32>
    %57 = arith.addf %54, %56 : vector<32x256xf32>
    %cst_45 = arith.constant 0.000000e+00 : f32
    %58 = vector.broadcast %cst_45 : f32 to vector<32x256xf32>
    %59 = arith.maximumf %57, %58 : vector<32x256xf32>
    %c0_46 = arith.constant 0 : index
    %c0_47 = arith.constant 0 : index
    %60 = vector.load %arg4[%c0_46, %c0_47] : memref<32x1xf32, #tpu.memory_space<vmem>>, vector<32x1xf32>
    %61 = vector.broadcast %60 : vector<32x1xf32> to vector<32x256xf32>
    %62 = arith.mulf %59, %61 : vector<32x256xf32>
    %63 = arith.truncf %62 : vector<32x256xf32> to vector<32x256xbf16>
    %c0_48 = arith.constant 0 : index
    %c0_49 = arith.constant 0 : index
    %64 = vector.load %arg5[%c0_48, %c0_49] : memref<32x256xbf16, #tpu.memory_space<vmem>>, vector<32x256xbf16>
    tpu.vector_store %arg5[%c0_48, %c0_49], %63 {strides = array<i32>} : memref<32x256xbf16, #tpu.memory_space<vmem>>, vector<32x256xbf16>,
    return
  }
  func.func @transform_0(%arg0: i32) -> (i32, i32) {
    %c0_i32 = arith.constant 0 : i32
    %c0_i32_0 = arith.constant 0 : i32
    %c0_i32_1 = arith.constant 0 : i32
    return %c0_i32, %c0_i32_0 : i32, i32
  }
  func.func @transform_1(%arg0: i32) -> (i32, i32, i32) {
    %c0_i32 = arith.constant 0 : i32
    %c0_i32_0 = arith.constant 0 : i32
    %c0_i32_1 = arith.constant 0 : i32
    return %c0_i32, %c0_i32_0, %arg0 : i32, i32, i32
  }
  func.func @transform_2(%arg0: i32) -> (i32, i32) {
    %c0_i32 = arith.constant 0 : i32
    %c0_i32_0 = arith.constant 0 : i32
    return %c0_i32, %arg0 : i32, i32
  }
  func.func @transform_3(%arg0: i32) -> (i32, i32) {
    %c0_i32 = arith.constant 0 : i32
    %c0_i32_0 = arith.constant 0 : i32
    %c0_i32_1 = arith.constant 0 : i32
    return %c0_i32, %c0_i32_0 : i32, i32
  }
  func.func @transform_4(%arg0: i32) -> (i32, i32) {
    %c0_i32 = arith.constant 0 : i32
    %c0_i32_0 = arith.constant 0 : i32
    return %c0_i32, %arg0 : i32, i32
  }
}

module attributes {stable_mosaic.version = 11 : i64} {
  func.func @_head_kernel(%arg0: i32, %arg1: memref<2x4x512xbf16, #tpu.memory_space<vmem>>, %arg2: memref<512x36xbf16, #tpu.memory_space<vmem>>, %arg3: memref<1x36xf32, #tpu.memory_space<vmem>>, %arg4: memref<2x36xf32, #tpu.memory_space<vmem>>) attributes {dimension_semantics = [#tpu.dimension_semantics<arbitrary>], iteration_bounds = array<i64: 1>, scalar_prefetch = 0 : i64, scratch_operands = 0 : i64, tpu.core_type = #tpu.core_type<tc>, window_params = [{pipeline_mode = #tpu.pipeline_mode<synchronous>, transform_indices = @transform_0, window_bounds = array<i64: 2, 4, 512>}, {pipeline_mode = #tpu.pipeline_mode<synchronous>, transform_indices = @transform_1, window_bounds = array<i64: 512, 36>}, {pipeline_mode = #tpu.pipeline_mode<synchronous>, transform_indices = @transform_2, window_bounds = array<i64: 1, 36>}, {pipeline_mode = #tpu.pipeline_mode<synchronous>, transform_indices = @transform_3, window_bounds = array<i64: 2, 36>}]} {
    %c0 = arith.constant 0 : index
    %c0_0 = arith.constant 0 : index
    %c0_1 = arith.constant 0 : index
    %0 = vector.load %arg1[%c0, %c0_0, %c0_1] : memref<2x4x512xbf16, #tpu.memory_space<vmem>>, vector<2x4x512xbf16>
    %1 = arith.extf %0 : vector<2x4x512xbf16> to vector<2x4x512xf32>
    %cst = arith.constant dense<0.000000e+00> : vector<2x512xf32>
    %2 = vector.multi_reduction <add>, %1, %cst [1] : vector<2x4x512xf32> to vector<2x512xf32>
    %cst_2 = arith.constant 2.500000e-01 : f32
    %3 = vector.broadcast %cst_2 : f32 to vector<2x512xf32>
    %4 = arith.mulf %2, %3 : vector<2x512xf32>
    %5 = arith.truncf %4 : vector<2x512xf32> to vector<2x512xbf16>
    %c0_3 = arith.constant 0 : index
    %c0_4 = arith.constant 0 : index
    %6 = vector.load %arg2[%c0_3, %c0_4] : memref<512x36xbf16, #tpu.memory_space<vmem>>, vector<512x36xbf16>
    %cst_5 = arith.constant dense<0.000000e+00> : vector<2x36xf32>
    %7 = tpu.matmul %5, %6, %cst_5 {dimension_numbers = #tpu.dot_dimension_numbers<[1], [0], [0], [1], [0, 0, 1, 1], [], []>} : vector<2x512xbf16>, vector<512x36xbf16>, vector<2x36xf32> -> vector<2x36xf32>
    %c0_6 = arith.constant 0 : index
    %c0_7 = arith.constant 0 : index
    %8 = vector.load %arg3[%c0_6, %c0_7] : memref<1x36xf32, #tpu.memory_space<vmem>>, vector<1x36xf32>
    %9 = vector.broadcast %8 : vector<1x36xf32> to vector<2x36xf32>
    %10 = arith.addf %7, %9 : vector<2x36xf32>
    %c0_8 = arith.constant 0 : index
    %c0_9 = arith.constant 0 : index
    %11 = vector.load %arg4[%c0_8, %c0_9] : memref<2x36xf32, #tpu.memory_space<vmem>>, vector<2x36xf32>
    tpu.vector_store %arg4[%c0_8, %c0_9], %10 {strides = array<i32>} : memref<2x36xf32, #tpu.memory_space<vmem>>, vector<2x36xf32>,
    return
  }
  func.func @transform_0(%arg0: i32) -> (i32, i32, i32) {
    %c0_i32 = arith.constant 0 : i32
    %c0_i32_0 = arith.constant 0 : i32
    %c0_i32_1 = arith.constant 0 : i32
    %c0_i32_2 = arith.constant 0 : i32
    return %c0_i32, %c0_i32_0, %c0_i32_1 : i32, i32, i32
  }
  func.func @transform_1(%arg0: i32) -> (i32, i32) {
    %c0_i32 = arith.constant 0 : i32
    %c0_i32_0 = arith.constant 0 : i32
    %c0_i32_1 = arith.constant 0 : i32
    return %c0_i32, %c0_i32_0 : i32, i32
  }
  func.func @transform_2(%arg0: i32) -> (i32, i32) {
    %c0_i32 = arith.constant 0 : i32
    %c0_i32_0 = arith.constant 0 : i32
    %c0_i32_1 = arith.constant 0 : i32
    return %c0_i32, %c0_i32_0 : i32, i32
  }
  func.func @transform_3(%arg0: i32) -> (i32, i32) {
    %c0_i32 = arith.constant 0 : i32
    %c0_i32_0 = arith.constant 0 : i32
    %c0_i32_1 = arith.constant 0 : i32
    return %c0_i32, %c0_i32_0 : i32, i32
  }
}

</mosaic_0001>

<bundles_post_ra>
// kernel: tile.7
= control target key start
LH: loop header
LB: loop body
LE: loop exit
PB: predicated region body
PF: predicated region fallthrough
CT: control target
= control target key end

     0   :  { %s22_s0 = inlined_call_operand.vmem [shape: f32[6], index: 0, kind: input, shape index: {}]   ;;  %s23_s1 = inlined_call_operand.vmem [shape: f32[6,6], index: 1, kind: output, shape index: {}]  }
   0x1   :  { %v4_v0 = vld [vmem:[%s22_s0] ss:$0 sm:$0xff] }
   0x2   :  { %5 = vst [vmem:[%s23_s1] sm:$0xff] %v4_v0 }

// kernel: mul.166
= control target key start
LH: loop header
LB: loop body
LE: loop exit
PB: predicated region body
PF: predicated region fallthrough
CT: control target
= control target key end

     0   :  { %s51_s10 = smov 30   ;;  %s52_s11 = smov 18   ;;  %vm3_vm0 = vcmask 48128   ;;  %vm9_vm1 = vcmask 294128   ;;  %vm15_vm2 = vcmask 244928   ;;  %vm21_vm3 = vcmask 195728   ;;  %s87_s0 = inlined_call_operand.vmem [shape: f32[6,6], index: 0, kind: input, shape index: {}]   ;;  %s88_s1 = inlined_call_operand.vmem [shape: f32[36], index: 1, kind: output, shape index: {}]  }
   0x1   :  { %v41_v0 = vld [vmem:[%s87_s0 + $0x5] sm:$0x1]   ;;  %v43_v1 = vld [vmem:[%s87_s0 + $0x3] sm:$0x1]   ;;  %v42_v2 = vld [vmem:[%s87_s0 + $0x4] sm:$0x1]  }
   0x2   :  { %7 = vrot.lane.b32.xlu0 %v41_v0, %s51_s10  ;;  %19 = vrot.lane.b32.xlu1 %v43_v1, %s52_s11  ;;  %v44_v3 = vld [vmem:[%s87_s0 + $0x2] sm:$0x1]   ;;  %v2_v4 = vld [vmem:[%s87_s0] sm:$0x1]   ;;  %s53_s18 = smov 24   ;;  %s54_s19 = smov 12  }
   0x3   :  { %4 = vst.msk [vmem:[#allocation0] sm:$0x1] %vm3_vm0, %v2_v4   ;;  %v45_v5 = vld [vmem:[%s87_s0 + $0x1] sm:$0x1]   ;;  %s55_s0 = smov 6   ;;  %vm27_vm4 = vcmask 146528  }
   0x4   :  { %vm33_vm5 = vcmask 97328  }
   0x6   :  { %13 = vrot.lane.b32.xlu0 %v42_v2, %s53_s18  ;;  %25 = vrot.lane.b32.xlu1 %v44_v3, %s54_s19 }
   0xa   :  { %31 = vrot.lane.b32.xlu0 %v45_v5, %s55_s0 }
  0x74   :  { %v8_v6 = vpop.permute.xlu0 %7   ;;  %v20_v7 = vpop.permute.xlu1 %19  }
  0x75   :  { %10 = vst.msk [vmem:[#allocation0] sm:$0x1] %vm9_vm1, %v8_v6  }
  0x78   :  { %v14_v8 = vpop.permute.xlu0 %13   ;;  %v26_v9 = vpop.permute.xlu1 %25  }
  0x79   :  { %16 = vst.msk [vmem:[#allocation0] sm:$0x1] %vm15_vm2, %v14_v8  }
  0x7a   :  { %22 = vst.msk [vmem:[#allocation0] sm:$0x1] %vm21_vm3, %v20_v7  }
  0x7b   :  { %28 = vst.msk [vmem:[#allocation0] sm:$0x1] %vm27_vm4, %v26_v9  }
  0x7c   :  { %v32_v10 = vpop.permute.xlu0 %31  }
  0x7d   :  { %34 = vst.msk [vmem:[#allocation0] sm:$0x1] %vm33_vm5, %v32_v10  }
  0x84   :  { %v38_v11 = vld [vmem:[#allocation0] sm:$0x1] }
  0x85   :  { %40 = vst [vmem:[%s88_s1] sm:$0x1] %v38_v11 }

</bundles_post_ra>
